<compile_context>
chip_gen: v7x
topology: tpu7x:2x2x1
jax: 0.10.0
libtpu: 0.0.40
codegen_flags: <defaults>
</compile_context>

<pallas_src>
import jax
import jax.numpy as jnp
from jax import lax
from jax.experimental import pallas as pl
from jax.experimental.pallas import tpu as pltpu


def _round_up(x, m):
    return (x + m - 1) // m * m


def _make_attn_kernel(n_actual, n_pad, tq, hpg, hdp, compute_dtype, approx_recip):
    """Fused (QKV proj + attention + output proj) kernel.

    Grid: (B, head_groups, q_tiles).  Refs:
      x_ref:     (1, n_pad, C)           one batch element (resident)
      wqkv_ref:  (HG, C, hpg*3*hdp)      resident fused QKV slab (scale folded in q)
      wproj_ref: (HG, hpg*hdp, C)        resident output-projection rows
      b_ref:     (1, C)                  output-projection bias (f32)
      o_ref:     (1, n_pad, C)           output (resident across hg, qi)
      acc_ref:   (n_pad, C) f32          projection accumulator (scratch)
      qkv_ref:   (n_pad, hpg*3*hdp)      per-head-group QKV cache (scratch)
    """
    hd3 = 3 * hdp

    def kernel(x_ref, wqkv_ref, wproj_ref, b_ref, o_ref, acc_ref, qkv_ref):
        hg = pl.program_id(1)
        qi = pl.program_id(2)

        # Zero the projection accumulator at the start of each batch element.
        @pl.when(jnp.logical_and(hg == 0, qi == 0))
        def _init():
            acc_ref[...] = jnp.zeros_like(acc_ref)

        # Fused QKV projection for this head group over all rows, computed once
        # per (b, head_group) and cached in VMEM for every q tile.
        @pl.when(qi == 0)
        def _project():
            qkv = jnp.dot(x_ref[0], wqkv_ref[hg],
                          preferred_element_type=jnp.float32)
            qkv_ref[...] = qkv.astype(qkv_ref.dtype)

        row0 = pl.multiple_of(qi * tq, tq)
        rows = pl.ds(row0, tq)

        ctx_parts = []
        for j in range(hpg):                       # static unroll over packed heads
            base = j * hd3
            q = qkv_ref[rows, pl.ds(base, hdp)]            # (tq, hdp)
            k = qkv_ref[:, pl.ds(base + hdp, hdp)]         # (n_pad, hdp)
            v = qkv_ref[:, pl.ds(base + 2 * hdp, hdp)]     # (n_pad, hdp)

            # Scores (softmax scale already folded into the q weight columns).
            s = lax.dot_general(q, k, (((1,), (1,)), ((), ())),
                                preferred_element_type=jnp.float32)  # (tq, n_pad)
            if n_pad > n_actual:
                # Mask padded key positions (x padding rows are zeros -> k rows
                # are zeros -> score 0, which must not receive softmax weight).
                key_idx = lax.broadcasted_iota(jnp.int32, (tq, n_pad), 1)
                s = jnp.where(key_idx < n_actual, s, -1e30)

            s = s - jnp.max(s, axis=-1, keepdims=True)
            p = jnp.exp(s)
            denom = jnp.sum(p, axis=-1, keepdims=True)
            o_un = jnp.dot(p.astype(compute_dtype), v,
                           preferred_element_type=jnp.float32)        # (tq, hdp)
            # Deferred softmax normalization: scale the (tq, hdp) context
            # instead of the (tq, n_pad) probabilities.
            ctx_parts.append(o_un * pl.reciprocal(denom, approx=approx_recip))

        ctx = ctx_parts[0] if hpg == 1 else jnp.concatenate(ctx_parts, axis=-1)

        # Fused output projection: accumulate this head group's contribution.
        acc_ref[rows, :] += jnp.dot(ctx.astype(compute_dtype), wproj_ref[hg],
                                    preferred_element_type=jnp.float32)

        @pl.when(hg == pl.num_programs(1) - 1)
        def _finalize():
            o_ref[0, rows, :] = (acc_ref[rows, :] + b_ref[...]).astype(o_ref.dtype)

    return kernel


def attention_forward(x, w_qkv, w_proj, b_proj, num_heads, *, mxu_dtype=None,
                      q_tile=256):
    """x: (B, N, C); w_qkv: (3C, C); w_proj: (C, C); b_proj: (C,).

    Matches PyTorch `Attention.forward` (eval mode, default flags).
    mxu_dtype=None -> exact path (operands kept in input dtype);
    mxu_dtype=jnp.bfloat16 -> bf16 MXU operands, f32 accumulation/softmax.
    """
    orig_dtype = x.dtype
    B, N, C = x.shape
    assert C % num_heads == 0, "dim must be divisible by num_heads"
    hd = C // num_heads
    scale = float(hd) ** -0.5

    compute_dtype = jnp.dtype(mxu_dtype) if mxu_dtype is not None else jnp.dtype(orig_dtype)
    approx_recip = mxu_dtype is not None

    # Head packing: process 2 heads per grid step when possible.
    hpg = 2 if num_heads % 2 == 0 else 1
    n_groups = num_heads // hpg

    # Lane-align the head dim (zero padding: padded cols/rows contribute 0).
    hdp = _round_up(hd, 128)

    # Pad N so the score tile's lane dim is a multiple of 128 and q tiles divide.
    if N <= q_tile:
        n_pad = _round_up(N, 128)
        tq = n_pad
    else:
        tq = q_tile
        n_pad = _round_up(N, tq)
    n_q_tiles = n_pad // tq

    # ---- one-time weight repacking (wrapper-side; lane-dense, scale folded) ----
    # PyTorch Linear computes x @ W.T; the 3C output axis splits as (3, H, hd).
    wt = w_qkv.T.reshape(C, 3, num_heads, hd)
    wt = jnp.transpose(wt, (2, 0, 1, 3))                         # (H, C, 3, hd)
    pad_hd = hdp - hd
    wq = jnp.pad(wt[:, :, 0, :] * scale, ((0, 0), (0, 0), (0, pad_hd)))
    wk = jnp.pad(wt[:, :, 1, :], ((0, 0), (0, 0), (0, pad_hd)))
    wv = jnp.pad(wt[:, :, 2, :], ((0, 0), (0, 0), (0, pad_hd)))
    wqkv_heads = jnp.concatenate([wq, wk, wv], axis=-1)          # (H, C, 3*hdp)
    # Group heads: (HG, C, hpg*3*hdp); head j of a group occupies columns
    # [j*3*hdp : (j+1)*3*hdp] = [q | k | v].
    wqkv_groups = jnp.transpose(
        wqkv_heads.reshape(n_groups, hpg, C, 3 * hdp), (0, 2, 1, 3)
    ).reshape(n_groups, C, hpg * 3 * hdp)

    # Output projection: ctx @ W_proj.T == sum_h o_h @ W_proj.T[h*hd:(h+1)*hd].
    wp = w_proj.T.reshape(num_heads, hd, C)
    wp = jnp.pad(wp, ((0, 0), (0, pad_hd), (0, 0)))              # (H, hdp, C)
    wproj_groups = wp.reshape(n_groups, hpg * hdp, C)

    bias = b_proj.reshape(1, C).astype(jnp.float32)

    # Cast the streamed operands once in the wrapper (halves DMA in bf16 mode).
    x_in = x.astype(compute_dtype)
    if n_pad != N:
        x_in = jnp.pad(x_in, ((0, 0), (0, n_pad - N), (0, 0)))
    wqkv_groups = wqkv_groups.astype(compute_dtype)
    wproj_groups = wproj_groups.astype(compute_dtype)

    kernel = _make_attn_kernel(N, n_pad, tq, hpg, hdp, compute_dtype, approx_recip)

    # Explicit scoped-VMEM budget (review item): blocks are double-buffered.
    in_b = jnp.dtype(compute_dtype).itemsize
    out_b = jnp.dtype(orig_dtype).itemsize
    vmem_est = (
        2 * n_pad * C * in_b                      # x block
        + 2 * n_pad * C * out_b                   # out block
        + 2 * wqkv_groups.size * in_b             # resident weight slabs
        + 2 * wproj_groups.size * in_b
        + 2 * C * 4                               # bias
        + n_pad * C * 4                           # f32 accumulator
        + n_pad * hpg * 3 * hdp * in_b            # QKV cache
        + 6 * tq * n_pad * 4                      # score/prob temporaries headroom
        + (2 << 20)
    )
    vmem_limit = int(min(max(vmem_est, 32 * 1024 * 1024), 100 * 1024 * 1024))

    out = pl.pallas_call(
        kernel,
        out_shape=jax.ShapeDtypeStruct((B, n_pad, C), orig_dtype),
        grid_spec=pltpu.PrefetchScalarGridSpec(
            num_scalar_prefetch=0,
            grid=(B, n_groups, n_q_tiles),
            in_specs=[
                pl.BlockSpec((1, n_pad, C), lambda b, hg, qi: (b, 0, 0)),   # x
                pl.BlockSpec((n_groups, C, hpg * 3 * hdp),                  # Wqkv
                             lambda b, hg, qi: (0, 0, 0)),
                pl.BlockSpec((n_groups, hpg * hdp, C),                      # Wproj
                             lambda b, hg, qi: (0, 0, 0)),
                pl.BlockSpec((1, C), lambda b, hg, qi: (0, 0)),             # bias
            ],
            out_specs=pl.BlockSpec((1, n_pad, C), lambda b, hg, qi: (b, 0, 0)),
            scratch_shapes=[
                pltpu.VMEM((n_pad, C), jnp.float32),                 # proj accumulator
                pltpu.VMEM((n_pad, hpg * 3 * hdp), compute_dtype),   # QKV cache
            ],
        ),
        compiler_params=pltpu.CompilerParams(
            dimension_semantics=("parallel", "arbitrary", "arbitrary"),
            vmem_limit_bytes=vmem_limit,
        ),
    )(x_in, wqkv_groups, wproj_groups, bias)

    return out[:, :N, :]


def _reference(x, w_qkv, w_proj, b_proj, num_heads):
    B, N, C = x.shape
    hd = C // num_heads
    scale = float(hd) ** -0.5
    with jax.default_matmul_precision("highest"):
        qkv = (x @ w_qkv.T).reshape(B, N, 3, num_heads, hd)
        qkv = jnp.transpose(qkv, (2, 0, 3, 1, 4))
        q, k, v = qkv[0], qkv[1], qkv[2]
        attn = jax.nn.softmax((q * scale) @ jnp.swapaxes(k, -2, -1), axis=-1)
        o = jnp.transpose(attn @ v, (0, 2, 1, 3)).reshape(B, N, C)
        return o @ w_proj.T + b_proj


if __name__ == "__main__":
    # Config 1: small shapes (B=2, N=8, C=32, H=8 -> head_dim=4).
    # Exercises key-padding masking (N=8 -> n_pad=128) and 2-head packing.
    B, N, C, H = 2, 8, 32, 8
    k1, k2, k3, k4 = jax.random.split(jax.random.PRNGKey(0), 4)
    x = jax.random.normal(k1, (B, N, C), dtype=jnp.float32)
    w_qkv = 0.05 * jax.random.normal(k2, (3 * C, C), dtype=jnp.float32)   # qkv_bias=False
    w_proj = 0.05 * jax.random.normal(k3, (C, C), dtype=jnp.float32)
    b_proj = 0.05 * jax.random.normal(k4, (C,), dtype=jnp.float32)        # proj_bias=True

    ref = _reference(x, w_qkv, w_proj, b_proj, H)

    # Exact path.
    out = jax.block_until_ready(attention_forward(x, w_qkv, w_proj, b_proj, H))
    assert out.shape == (B, N, C)
    assert jnp.allclose(out, ref, atol=2e-3, rtol=2e-3), "f32 path mismatch vs reference"

    # bf16 MXU-operand perf path (f32 accumulation / softmax).
    out_bf16 = jax.block_until_ready(
        attention_forward(x, w_qkv, w_proj, b_proj, H, mxu_dtype=jnp.bfloat16))
    assert jnp.allclose(out_bf16, ref, atol=3e-2, rtol=3e-2), "bf16 path mismatch vs reference"

    # Config 2: multi-q-tile path (N=300 -> n_pad=512, two q tiles of 256).
    B2, N2, C2, H2 = 1, 300, 32, 4
    k5, k6, k7, k8 = jax.random.split(jax.random.PRNGKey(1), 4)
    x2 = jax.random.normal(k5, (B2, N2, C2), dtype=jnp.float32)
    w_qkv2 = 0.05 * jax.random.normal(k6, (3 * C2, C2), dtype=jnp.float32)
    w_proj2 = 0.05 * jax.random.normal(k7, (C2, C2), dtype=jnp.float32)
    b_proj2 = 0.05 * jax.random.normal(k8, (C2,), dtype=jnp.float32)
    ref2 = _reference(x2, w_qkv2, w_proj2, b_proj2, H2)
    out2 = jax.block_until_ready(attention_forward(x2, w_qkv2, w_proj2, b_proj2, H2))
    assert out2.shape == (B2, N2, C2)
    assert jnp.allclose(out2, ref2, atol=2e-3, rtol=2e-3), "multi-tile path mismatch"

    print("KERNEL_OK")
</pallas_src>

<mosaic_0001>
module attributes {stable_mosaic.version = 11 : i64} {
  func.func @kernel(%arg0: i32, %arg1: i32, %arg2: i32, %arg3: memref<1x128x32xf32, #tpu.memory_space<vmem>>, %arg4: memref<4x32x768xf32, #tpu.memory_space<vmem>>, %arg5: memref<4x256x32xf32, #tpu.memory_space<vmem>>, %arg6: memref<1x32xf32, #tpu.memory_space<vmem>>, %arg7: memref<1x128x32xf32, #tpu.memory_space<vmem>>, %arg8: memref<128x32xf32, #tpu.memory_space<vmem>>, %arg9: memref<128x768xf32, #tpu.memory_space<vmem>>) attributes {dimension_semantics = [#tpu.dimension_semantics<parallel>, #tpu.dimension_semantics<arbitrary>, #tpu.dimension_semantics<arbitrary>], iteration_bounds = array<i64: 2, 4, 1>, scalar_prefetch = 0 : i64, scratch_operands = 2 : i64, tpu.core_type = #tpu.core_type<tc>, window_params = [{transform_indices = @transform_0, window_bounds = array<i64: 1, 128, 32>}, {pipeline_mode = #tpu.pipeline_mode<synchronous>, transform_indices = @transform_1, window_bounds = array<i64: 4, 32, 768>}, {pipeline_mode = #tpu.pipeline_mode<synchronous>, transform_indices = @transform_2, window_bounds = array<i64: 4, 256, 32>}, {pipeline_mode = #tpu.pipeline_mode<synchronous>, transform_indices = @transform_3, window_bounds = array<i64: 1, 32>}, {transform_indices = @transform_4, window_bounds = array<i64: 1, 128, 32>}]} {
    %c0_i32 = arith.constant 0 : i32
    %0 = arith.cmpi eq, %arg1, %c0_i32 : i32
    %c0_i32_0 = arith.constant 0 : i32
    %1 = arith.cmpi eq, %arg2, %c0_i32_0 : i32
    %2 = arith.andi %0, %1 : i1
    %3 = arith.extui %2 : i1 to i32
    %c0_i32_1 = arith.constant 0 : i32
    %4 = arith.cmpi ne, %3, %c0_i32_1 : i32
    scf.if %4 {
      %cst_24 = arith.constant 0.000000e+00 : f32
      %65 = vector.broadcast %cst_24 : f32 to vector<128x32xf32>
      %c0_25 = arith.constant 0 : index
      %c0_26 = arith.constant 0 : index
      %66 = vector.load %arg8[%c0_25, %c0_26] : memref<128x32xf32, #tpu.memory_space<vmem>>, vector<128x32xf32>
      tpu.vector_store %arg8[%c0_25, %c0_26], %65 {strides = array<i32>} : memref<128x32xf32, #tpu.memory_space<vmem>>, vector<128x32xf32>,
    } else {
    }
    %c0_i32_2 = arith.constant 0 : i32
    %5 = arith.cmpi eq, %arg2, %c0_i32_2 : i32
    %6 = arith.extui %5 : i1 to i32
    %c0_i32_3 = arith.constant 0 : i32
    %7 = arith.cmpi ne, %6, %c0_i32_3 : i32
    scf.if %7 {
      %c0_24 = arith.constant 0 : index
      %c0_25 = arith.constant 0 : index
      %c0_26 = arith.constant 0 : index
      %65 = vector.load %arg3[%c0_24, %c0_25, %c0_26] : memref<1x128x32xf32, #tpu.memory_space<vmem>>, vector<1x128x32xf32>
      %66 = vector.shape_cast %65 : vector<1x128x32xf32> to vector<128x32xf32>
      %67 = arith.index_cast %arg1 : i32 to index
      %c0_27 = arith.constant 0 : index
      %c0_28 = arith.constant 0 : index
      %68 = vector.load %arg4[%67, %c0_27, %c0_28] : memref<4x32x768xf32, #tpu.memory_space<vmem>>, vector<1x32x768xf32>
      %69 = vector.shape_cast %68 : vector<1x32x768xf32> to vector<32x768xf32>
      %cst_29 = arith.constant dense<0.000000e+00> : vector<128x768xf32>
      %70 = tpu.matmul %66, %69, %cst_29 {dimension_numbers = #tpu.dot_dimension_numbers<[1], [0], [0], [1], [0, 0, 1, 1], [], []>} : vector<128x32xf32>, vector<32x768xf32>, vector<128x768xf32> -> vector<128x768xf32>
      %c0_30 = arith.constant 0 : index
      %c0_31 = arith.constant 0 : index
      %71 = vector.load %arg9[%c0_30, %c0_31] : memref<128x768xf32, #tpu.memory_space<vmem>>, vector<128x768xf32>
      tpu.vector_store %arg9[%c0_30, %c0_31], %70 {strides = array<i32>} : memref<128x768xf32, #tpu.memory_space<vmem>>, vector<128x768xf32>,
    } else {
    }
    %c128_i32 = arith.constant 128 : i32
    %8 = arith.muli %arg2, %c128_i32 : i32
    %9 = tpu.assume_multiple %8, 128 : i32
    %10 = arith.index_cast %9 : i32 to index
    %c0 = arith.constant 0 : index
    %11 = vector.load %arg9[%10, %c0] : memref<128x768xf32, #tpu.memory_space<vmem>>, vector<128x128xf32>
    %c0_4 = arith.constant 0 : index
    %c128 = arith.constant 128 : index
    %12 = vector.load %arg9[%c0_4, %c128] : memref<128x768xf32, #tpu.memory_space<vmem>>, vector<128x128xf32>
    %c0_5 = arith.constant 0 : index
    %c256 = arith.constant 256 : index
    %13 = vector.load %arg9[%c0_5, %c256] : memref<128x768xf32, #tpu.memory_space<vmem>>, vector<128x128xf32>
    %cst = arith.constant dense<0.000000e+00> : vector<128x128xf32>
    %14 = tpu.matmul %11, %12, %cst {dimension_numbers = #tpu.dot_dimension_numbers<[1], [1], [0], [0], [0, 0, 1, 0], [], []>} : vector<128x128xf32>, vector<128x128xf32>, vector<128x128xf32> -> vector<128x128xf32>
    %15 = tpu.iota {dimensions = array<i32: 1>} : vector<128x128xi32>
    %c8_i32 = arith.constant 8 : i32
    %16 = vector.broadcast %c8_i32 : i32 to vector<128x128xi32>
    %17 = arith.cmpi slt, %15, %16 : vector<128x128xi32>
    %cst_6 = arith.constant -1.000000e+30 : f32
    %18 = vector.broadcast %cst_6 : f32 to vector<128x128xf32>
    %19 = arith.select %17, %14, %18 : vector<128x128xi1>, vector<128x128xf32>
    %cst_7 = arith.constant dense<0xFF800000> : vector<128xf32>
    %20 = vector.multi_reduction <maximumf>, %19, %cst_7 [1] : vector<128x128xf32> to vector<128xf32>
    %21 = vector.shape_cast %20 : vector<128xf32> to vector<128x1xf32>
    %22 = vector.broadcast %21 : vector<128x1xf32> to vector<128x128xf32>
    %23 = arith.subf %19, %22 : vector<128x128xf32>
    %24 = math.exp %23 : vector<128x128xf32>
    %cst_8 = arith.constant dense<0.000000e+00> : vector<128xf32>
    %25 = vector.multi_reduction <add>, %24, %cst_8 [1] : vector<128x128xf32> to vector<128xf32>
    %26 = vector.shape_cast %25 : vector<128xf32> to vector<128x1xf32>
    %cst_9 = arith.constant dense<0.000000e+00> : vector<128x128xf32>
    %27 = tpu.matmul %24, %13, %cst_9 {dimension_numbers = #tpu.dot_dimension_numbers<[1], [0], [0], [1], [0, 0, 1, 1], [], []>} : vector<128x128xf32>, vector<128x128xf32>, vector<128x128xf32> -> vector<128x128xf32>
    %28 = tpu.reciprocal %26 : vector<128x1xf32> -> vector<128x1xf32>
    %29 = vector.broadcast %28 : vector<128x1xf32> to vector<128x128xf32>
    %30 = arith.mulf %27, %29 : vector<128x128xf32>
    %31 = arith.index_cast %9 : i32 to index
    %c384 = arith.constant 384 : index
    %32 = vector.load %arg9[%31, %c384] : memref<128x768xf32, #tpu.memory_space<vmem>>, vector<128x128xf32>
    %c0_10 = arith.constant 0 : index
    %c512 = arith.constant 512 : index
    %33 = vector.load %arg9[%c0_10, %c512] : memref<128x768xf32, #tpu.memory_space<vmem>>, vector<128x128xf32>
    %c0_11 = arith.constant 0 : index
    %c640 = arith.constant 640 : index
    %34 = vector.load %arg9[%c0_11, %c640] : memref<128x768xf32, #tpu.memory_space<vmem>>, vector<128x128xf32>
    %cst_12 = arith.constant dense<0.000000e+00> : vector<128x128xf32>
    %35 = tpu.matmul %32, %33, %cst_12 {dimension_numbers = #tpu.dot_dimension_numbers<[1], [1], [0], [0], [0, 0, 1, 0], [], []>} : vector<128x128xf32>, vector<128x128xf32>, vector<128x128xf32> -> vector<128x128xf32>
    %36 = tpu.iota {dimensions = array<i32: 1>} : vector<128x128xi32>
    %c8_i32_13 = arith.constant 8 : i32
    %37 = vector.broadcast %c8_i32_13 : i32 to vector<128x128xi32>
    %38 = arith.cmpi slt, %36, %37 : vector<128x128xi32>
    %cst_14 = arith.constant -1.000000e+30 : f32
    %39 = vector.broadcast %cst_14 : f32 to vector<128x128xf32>
    %40 = arith.select %38, %35, %39 : vector<128x128xi1>, vector<128x128xf32>
    %cst_15 = arith.constant dense<0xFF800000> : vector<128xf32>
    %41 = vector.multi_reduction <maximumf>, %40, %cst_15 [1] : vector<128x128xf32> to vector<128xf32>
    %42 = vector.shape_cast %41 : vector<128xf32> to vector<128x1xf32>
    %43 = vector.broadcast %42 : vector<128x1xf32> to vector<128x128xf32>
    %44 = arith.subf %40, %43 : vector<128x128xf32>
    %45 = math.exp %44 : vector<128x128xf32>
    %cst_16 = arith.constant dense<0.000000e+00> : vector<128xf32>
    %46 = vector.multi_reduction <add>, %45, %cst_16 [1] : vector<128x128xf32> to vector<128xf32>
    %47 = vector.shape_cast %46 : vector<128xf32> to vector<128x1xf32>
    %cst_17 = arith.constant dense<0.000000e+00> : vector<128x128xf32>
    %48 = tpu.matmul %45, %34, %cst_17 {dimension_numbers = #tpu.dot_dimension_numbers<[1], [0], [0], [1], [0, 0, 1, 1], [], []>} : vector<128x128xf32>, vector<128x128xf32>, vector<128x128xf32> -> vector<128x128xf32>
    %49 = tpu.reciprocal %47 : vector<128x1xf32> -> vector<128x1xf32>
    %50 = vector.broadcast %49 : vector<128x1xf32> to vector<128x128xf32>
    %51 = arith.mulf %48, %50 : vector<128x128xf32>
    %52 = tpu.concatenate %30, %51 in 1 : vector<128x128xf32>, vector<128x128xf32> -> vector<128x256xf32>
    %53 = arith.index_cast %9 : i32 to index
    %c0_18 = arith.constant 0 : index
    %54 = vector.load %arg8[%53, %c0_18] : memref<128x32xf32, #tpu.memory_space<vmem>>, vector<128x32xf32>
    %55 = arith.index_cast %arg1 : i32 to index
    %c0_19 = arith.constant 0 : index
    %c0_20 = arith.constant 0 : index
    %56 = vector.load %arg5[%55, %c0_19, %c0_20] : memref<4x256x32xf32, #tpu.memory_space<vmem>>, vector<1x256x32xf32>
    %57 = vector.shape_cast %56 : vector<1x256x32xf32> to vector<256x32xf32>
    %cst_21 = arith.constant dense<0.000000e+00> : vector<128x32xf32>
    %58 = tpu.matmul %52, %57, %cst_21 {dimension_numbers = #tpu.dot_dimension_numbers<[1], [0], [0], [1], [0, 0, 1, 1], [], []>} : vector<128x256xf32>, vector<256x32xf32>, vector<128x32xf32> -> vector<128x32xf32>
    %59 = arith.addf %54, %58 : vector<128x32xf32>
    %60 = arith.index_cast %9 : i32 to index
    %c0_22 = arith.constant 0 : index
    %61 = vector.load %arg8[%60, %c0_22] : memref<128x32xf32, #tpu.memory_space<vmem>>, vector<128x32xf32>
    tpu.vector_store %arg8[%60, %c0_22], %59 {strides = array<i32>} : memref<128x32xf32, #tpu.memory_space<vmem>>, vector<128x32xf32>,
    %c3_i32 = arith.constant 3 : i32
    %62 = arith.cmpi eq, %arg1, %c3_i32 : i32
    %63 = arith.extui %62 : i1 to i32
    %c0_i32_23 = arith.constant 0 : i32
    %64 = arith.cmpi ne, %63, %c0_i32_23 : i32
    scf.if %64 {
      %65 = arith.index_cast %9 : i32 to index
      %c0_24 = arith.constant 0 : index
      %66 = vector.load %arg8[%65, %c0_24] : memref<128x32xf32, #tpu.memory_space<vmem>>, vector<128x32xf32>
      %c0_25 = arith.constant 0 : index
      %c0_26 = arith.constant 0 : index
      %67 = vector.load %arg6[%c0_25, %c0_26] : memref<1x32xf32, #tpu.memory_space<vmem>>, vector<1x32xf32>
      %68 = vector.broadcast %67 : vector<1x32xf32> to vector<128x32xf32>
      %69 = arith.addf %66, %68 : vector<128x32xf32>
      %c0_27 = arith.constant 0 : index
      %70 = arith.index_cast %9 : i32 to index
      %c0_28 = arith.constant 0 : index
      %71 = vector.load %arg7[%c0_27, %70, %c0_28] : memref<1x128x32xf32, #tpu.memory_space<vmem>>, vector<1x128x32xf32>
      %72 = vector.shape_cast %71 : vector<1x128x32xf32> to vector<128x32xf32>
      %73 = vector.shape_cast %69 : vector<128x32xf32> to vector<1x128x32xf32>
      tpu.vector_store %arg7[%c0_27, %70, %c0_28], %73 {strides = array<i32>} : memref<1x128x32xf32, #tpu.memory_space<vmem>>, vector<1x128x32xf32>,
    } else {
    }
    return
  }
  func.func @transform_0(%arg0: i32, %arg1: i32, %arg2: i32) -> (i32, i32, i32) {
    %c0_i32 = arith.constant 0 : i32
    %c0_i32_0 = arith.constant 0 : i32
    %c0_i32_1 = arith.constant 0 : i32
    return %arg0, %c0_i32, %c0_i32_0 : i32, i32, i32
  }
  func.func @transform_1(%arg0: i32, %arg1: i32, %arg2: i32) -> (i32, i32, i32) {
    %c0_i32 = arith.constant 0 : i32
    %c0_i32_0 = arith.constant 0 : i32
    %c0_i32_1 = arith.constant 0 : i32
    %c0_i32_2 = arith.constant 0 : i32
    return %c0_i32, %c0_i32_0, %c0_i32_1 : i32, i32, i32
  }
  func.func @transform_2(%arg0: i32, %arg1: i32, %arg2: i32) -> (i32, i32, i32) {
    %c0_i32 = arith.constant 0 : i32
    %c0_i32_0 = arith.constant 0 : i32
    %c0_i32_1 = arith.constant 0 : i32
    %c0_i32_2 = arith.constant 0 : i32
    return %c0_i32, %c0_i32_0, %c0_i32_1 : i32, i32, i32
  }
  func.func @transform_3(%arg0: i32, %arg1: i32, %arg2: i32) -> (i32, i32) {
    %c0_i32 = arith.constant 0 : i32
    %c0_i32_0 = arith.constant 0 : i32
    %c0_i32_1 = arith.constant 0 : i32
    return %c0_i32, %c0_i32_0 : i32, i32
  }
  func.func @transform_4(%arg0: i32, %arg1: i32, %arg2: i32) -> (i32, i32, i32) {
    %c0_i32 = arith.constant 0 : i32
    %c0_i32_0 = arith.constant 0 : i32
    %c0_i32_1 = arith.constant 0 : i32
    return %arg0, %c0_i32, %c0_i32_0 : i32, i32, i32
  }
}

</mosaic_0001>

<bundles_post_ra>
// kernel: tpu_custom_call.1
= control target key start
LH: loop header
LB: loop body
LE: loop exit
PB: predicated region body
PF: predicated region fallthrough
CT: control target
= control target key end

     0   :  { %s3212_s15 = smov 0   ;;  %s3214_s16 = smov 0   ;;  %s3957_s0 = inlined_call_operand.vmem [shape: f32[2,128,32], index: 0, kind: input, shape index: {}]   ;;  %s3958_s1 = inlined_call_operand.vmem [shape: f32[4,32,768], index: 1, kind: input, shape index: {}]   ;;  %s3959_s2 = inlined_call_operand.vmem [shape: f32[4,256,32], index: 2, kind: input, shape index: {}]   ;;  %s3960_s3 = inlined_call_operand.vmem [shape: f32[1,32], index: 3, kind: input, shape index: {}]   ;;  %s3961_s4 = inlined_call_operand.vmem [shape: f32[2,128,32], index: 4, kind: output, shape index: {}]  }
   0x1   :  { %s3216_s17 = smov 0   ;;  %s3218_s18 = smov 0  }
   0x2   :  { %s3220_s19 = smov 0  }
   0x3 LB: > { %s29_s20 = sadd.s32 1, %s3175_s17  ;;  %s33_s21 = sadd.s32 1, %s3179_s18  ;;  %s3183_s19 = sphi %s3220_s19, %s14_s19   ;;  %s3179_s18 = sphi %s3218_s18, %s3965_s18   ;;  %s3175_s17 = sphi %s3216_s17, %s3964_s17   ;;  %s3171_s16 = sphi %s3214_s16, %s3963_s16   ;;  %s3167_s15 = sphi %s3212_s15, %s3962_s15  }
   0x4   : > { %p31_p0 = scmp.ge.s32.totalorder %s29_s20, 4  ;;  %p2291_p1 = scmp.ge.s32.totalorder %s3183_s19, 1 }
   0x5   : > { %p181_p2 = scmp.lt.s32.totalorder %s3183_s19, 9 }
   0x6   : > { %s3967_s20 = smov (%p31_p0, %s29_s20), 0  ;;  %s3969_s21 = smov (!%p31_p0, %s33_s21), %s3179_s18 }
   0x7   : > { %p182_p3 = pnand %p2291_p1, %p181_p2  ;;  %p35_p4 = scmp.ge.s32.totalorder %s3969_s21, 2 }
   0x8   : > { %p207_p5 = scmp.lt.s32.totalorder (!%p182_p3), %s3171_s16, 1  ;;  %p217_p6 = scmp.eq.s32.totalorder (!%p182_p3), %s3167_s15, 0 }
   0x9   : > { %s3971_s21 = smov (%p35_p4, %s3969_s21), 0  ;;  %185 = sbr.rel (%p182_p3) target bundleno = 1234 (0x4d2), region = 36 }
  0x10   : > { %s3973_s16 = smov (!%p207_p5, %s3171_s16), 1  ;;  %222 = sbr.rel (!%p217_p6) target bundleno = 26 (0x1a), region = 40 }
  0x11   : > { %s2351_s22 = sshll.u32 %s3973_s16, 7  ;;  %vm223_vm0 = vcmask (%p217_p6), 261120   ;;  %v3185_v0 = vmov (%p217_p6), 0.0  }
  0x12   : > { %s3248_s25 = scalar_lea.vmem %s3957_s0, %s2351_s22  ;;  %s3253_s28 = scalar_lea.vmem %s3961_s4, %s2351_s22  ;;  %224 = vst.msk [vmem:[#allocation2] sm:$0xff] (%p217_p6), %vm223_vm0, %v3185_v0  ;;  %225 = vst.msk [vmem:[#allocation2 + $0x8] sm:$0xff] (%p217_p6), %vm223_vm0, %v3185_v0 }
  0x13   : > { %226 = vst.msk [vmem:[#allocation2 + $0x10] sm:$0xff] (%p217_p6), %vm223_vm0, %v3185_v0  ;;  %227 = vst.msk [vmem:[#allocation2 + $0x18] sm:$0xff] (%p217_p6), %vm223_vm0, %v3185_v0 }
  0x14   : > { %228 = vst.msk [vmem:[#allocation2 + $0x20] sm:$0xff] (%p217_p6), %vm223_vm0, %v3185_v0  ;;  %229 = vst.msk [vmem:[#allocation2 + $0x28] sm:$0xff] (%p217_p6), %vm223_vm0, %v3185_v0 }
  0x15   : > { %230 = vst.msk [vmem:[#allocation2 + $0x30] sm:$0xff] (%p217_p6), %vm223_vm0, %v3185_v0  ;;  %231 = vst.msk [vmem:[#allocation2 + $0x38] sm:$0xff] (%p217_p6), %vm223_vm0, %v3185_v0 }
  0x16   : > { %232 = vst.msk [vmem:[#allocation2 + $0x40] sm:$0xff] (%p217_p6), %vm223_vm0, %v3185_v0  ;;  %233 = vst.msk [vmem:[#allocation2 + $0x48] sm:$0xff] (%p217_p6), %vm223_vm0, %v3185_v0 }
  0x17   : > { %234 = vst.msk [vmem:[#allocation2 + $0x50] sm:$0xff] %vm223_vm0, %v3185_v0  ;;  %235 = vst.msk [vmem:[#allocation2 + $0x58] sm:$0xff] %vm223_vm0, %v3185_v0 }
  0x18   : > { %236 = vst.msk [vmem:[#allocation2 + $0x60] sm:$0xff] %vm223_vm0, %v3185_v0  ;;  %237 = vst.msk [vmem:[#allocation2 + $0x68] sm:$0xff] %vm223_vm0, %v3185_v0 }
  0x19   : > { %238 = vst.msk [vmem:[#allocation2 + $0x70] sm:$0xff] %vm223_vm0, %v3185_v0  ;;  %239 = vst.msk [vmem:[#allocation2 + $0x78] sm:$0xff] %vm223_vm0, %v3185_v0 }
  0x1a PF: > { %s2354_s29 = smul.u32 192, %s3167_s15  ;;  %v3186_v1 = vmov 0.0   ;;  %v3294_v21 = vld [vmem:[%s3248_s25] sm:$0xff]  ;;  %vm286_vm1 = vcmask 261120   ;;  %v244_v37 = vld [vmem:[%s3248_s25 + $0x8] sm:$0xff]  ;;  %v245_v42 = vld [vmem:[%s3248_s25 + $0x10] sm:$0xff] }
  0x1b   : > { %399 = vmatprep.mubr.f32.mxu0 %v3186_v1  ;;  %447 = vmatprep.mubr.f32.mxu1 %v3186_v1  ;;  %v3299_v24 = vld [vmem:[%s3248_s25 + $0x40] sm:$0xff]  ;;  %v3316_v38 = vld [vmem:[%s3248_s25 + $0x48] sm:$0xff]  ;;  %v3326_v43 = vld [vmem:[%s3248_s25 + $0x50] sm:$0xff]  ;;  %s2346_s7 = sshll.u32 %s3167_s15, 8  ;;  %p2347_p7 = scmp.ne.s32.totalorder %s3167_s15, 3 }
  0x1c   : > { %s3277_s6 = scalar_lea.vmem %s3958_s1, %s2354_s29  ;;  %v246_v44 = vld [vmem:[%s3248_s25 + $0x18] sm:$0xff]  ;;  %v247_v46 = vld [vmem:[%s3248_s25 + $0x20] sm:$0xff]  ;;  %v248_v48 = vld [vmem:[%s3248_s25 + $0x28] sm:$0xff]  ;;  %s3811_s10 = scalar_lea.vmem %s3959_s2, %s2346_s7 }
  0x1d   : > { %v263_v2 = vld [vmem:[%s3277_s6 + $0x8] sm:$0xff]  ;;  %v269_v3 = vld [vmem:[%s3277_s6 + $0x38] sm:$0xff]  ;;  %v262_v4 = vld [vmem:[%s3277_s6] sm:$0xff] }
  0x1e   : > { %v2787_v5 = vpack.c.bf16 %v269_v3, %v263_v2  ;;  %v268_v6 = vld [vmem:[%s3277_s6 + $0x30] sm:$0xff]  ;;  %v275_v7 = vld [vmem:[%s3277_s6 + $0x68] sm:$0xff]  ;;  %v281_v8 = vld [vmem:[%s3277_s6 + $0x98] sm:$0xff] }
  0x1f   : > { %v2789_v9 = vpack.c.bf16 %v268_v6, %v262_v4  ;;  %v2791_v10 = vpack.c.bf16 %v281_v8, %v275_v7  ;;  %v274_v11 = vld [vmem:[%s3277_s6 + $0x60] sm:$0xff]  ;;  %v280_v12 = vld [vmem:[%s3277_s6 + $0x90] sm:$0xff]  ;;  %v267_v13 = vld [vmem:[%s3277_s6 + $0x28] sm:$0xff] }
  0x20   : > { %2788 = vmatprep.subr.bf16.mxu0 %v2787_v5  ;;  %2971 = vmatprep.subr.bf16.mxu1 %v2787_v5  ;;  %v273_v14 = vld [vmem:[%s3277_s6 + $0x58] sm:$0xff]  ;;  %v2793_v15 = vpack.c.bf16 %v280_v12, %v274_v11  ;;  %v266_v17 = vld [vmem:[%s3277_s6 + $0x20] sm:$0xff]  ;;  %v272_v18 = vld [vmem:[%s3277_s6 + $0x50] sm:$0xff] }
  0x21   : > { %2790 = vmatpush1.bf16.msra.mxu0 %v2789_v9  ;;  %2973 = vmatpush1.bf16.msra.mxu1 %v2789_v9  ;;  %v2803_v16 = vpack.c.bf16 %v273_v14, %v267_v13  ;;  %v279_v19 = vld [vmem:[%s3277_s6 + $0x88] sm:$0xff]  ;;  %v285_v20 = vld [vmem:[%s3277_s6 + $0xb8] sm:$0xff]  ;;  %v2805_v25 = vpack.c.bf16 %v272_v18, %v266_v17  ;;  %v264_v27 = vld [vmem:[%s3277_s6 + $0x10] sm:$0xff] }
  0x22   : > { %2792 = vmatprep.subr.bf16.mxu0 %v2791_v10  ;;  %2972 = vmatprep.subr.bf16.mxu1 %v2791_v10  ;;  %v265_v22 = vld [vmem:[%s3277_s6 + $0x18] sm:$0xff]  ;;  %v271_v23 = vld [vmem:[%s3277_s6 + $0x48] sm:$0xff]  ;;  %v270_v28 = vld [vmem:[%s3277_s6 + $0x40] sm:$0xff]  ;;  %v2807_v29 = vpack.c.bf16 %v285_v20, %v279_v19 }
  0x23   : > { %v2795_v26 = vpack.c.bf16 %v271_v23, %v265_v22  ;;  %v278_v30 = vld [vmem:[%s3277_s6 + $0x80] sm:$0xff]  ;;  %v284_v31 = vld [vmem:[%s3277_s6 + $0xb0] sm:$0xff]  ;;  %v2797_v32 = vpack.c.bf16 %v270_v28, %v264_v27  ;;  %v277_v33 = vld [vmem:[%s3277_s6 + $0x78] sm:$0xff] }
  0x24   : > { %v283_v34 = vld [vmem:[%s3277_s6 + $0xa8] sm:$0xff]  ;;  %v276_v35 = vld [vmem:[%s3277_s6 + $0x70] sm:$0xff]  ;;  %v282_v36 = vld [vmem:[%s3277_s6 + $0xa0] sm:$0xff]  ;;  %v2809_v39 = vpack.c.bf16 %v284_v31, %v278_v30 }
  0x25   : > { %2794 = vmatpush1.bf16.msra.mxu0 %v2793_v15  ;;  %2974 = vmatpush1.bf16.msra.mxu1 %v2793_v15  ;;  %v2799_v40 = vpack.c.bf16 %v283_v34, %v277_v33  ;;  %v2801_v41 = vpack.c.bf16 %v282_v36, %v276_v35  ;;  %v3335_v45 = vld [vmem:[%s3248_s25 + $0x58] sm:$0xff]  ;;  %v3344_v47 = vld [vmem:[%s3248_s25 + $0x60] sm:$0xff]  ;;  %v3353_v49 = vld [vmem:[%s3248_s25 + $0x68] sm:$0xff] }
  0x26   : > { %2804 = vmatprep.subr.bf16.mxu0 %v2803_v16  ;;  %2796 = vmatprep.subr.bf16.mxu1 %v2795_v26  ;;  %v249_v50 = vld [vmem:[%s3248_s25 + $0x30] sm:$0xff]  ;;  %v250_v52 = vld [vmem:[%s3248_s25 + $0x38] sm:$0xff] }
  0x27   : > { %v3362_v51 = vld [vmem:[%s3248_s25 + $0x70] sm:$0xff]  ;;  %v3371_v53 = vld [vmem:[%s3248_s25 + $0x78] sm:$0xff] }
  0x28   : > { %2298 = vmatmul.mubr.msk.f32.vlgmr.msra.gmra.mrb[0].mxu0 %vm286_vm1, %v3294_v21  ;;  %2306 = vmatmul.mubr.msk.f32.vlgmr.msra.gmra.mrb[0].mxu1 %vm286_vm1, %v3299_v24 }
  0x29   : > { %405 = vmatprep.mubr.f32.mxu0 %v3186_v1  ;;  %2806 = vmatpush1.bf16.msra.mxu0 %v2805_v25 }
  0x2a   : > { %453 = vmatprep.mubr.f32.mxu1 %v3186_v1  ;;  %2808 = vmatprep.subr.bf16.mxu0 %v2807_v29 }
  0x2b   : > { %2798 = vmatpush1.bf16.msra.mxu1 %v2797_v32 }
  0x2c   : > { %2299 = vmatmul.mubr.msk.f32.gmra.mrb[2].mxu0 %vm286_vm1, %v244_v37  ;;  %2307 = vmatmul.mubr.msk.f32.gmra.mrb[2].mxu1 %vm286_vm1, %v3316_v38 }
  0x2d   : > { %411 = vmatprep.mubr.f32.mxu0 %v3186_v1  ;;  %459 = vmatprep.mubr.f32.mxu1 %v3186_v1 }
  0x2e   : > { %2810 = vmatpush1.bf16.msra.mxu0 %v2809_v39  ;;  %2800 = vmatprep.subr.bf16.mxu1 %v2799_v40 }
  0x2f   : > { %2802 = vmatpush1.bf16.msra.mxu1 %v2801_v41 }
  0x30   : > { %2300 = vmatmul.mubr.msk.f32.gmra.mrb[4].mxu0 %vm286_vm1, %v245_v42  ;;  %2308 = vmatmul.mubr.msk.f32.gmra.mrb[4].mxu1 %vm286_vm1, %v3326_v43 }
  0x31   : > { %417 = vmatprep.mubr.f32.mxu0 %v3186_v1  ;;  %465 = vmatprep.mubr.f32.mxu1 %v3186_v1 }
  0x34   : > { %2301 = vmatmul.mubr.msk.f32.gmra.mrb[6].mxu0 %vm286_vm1, %v246_v44  ;;  %2309 = vmatmul.mubr.msk.f32.gmra.mrb[6].mxu1 %vm286_vm1, %v3335_v45 }
  0x35   : > { %423 = vmatprep.mubr.f32.mxu0 %v3186_v1  ;;  %471 = vmatprep.mubr.f32.mxu1 %v3186_v1 }
  0x38   : > { %2302 = vmatmul.mubr.msk.f32.gmra.mrb[8].mxu0 %vm286_vm1, %v247_v46  ;;  %2310 = vmatmul.mubr.msk.f32.gmra.mrb[8].mxu1 %vm286_vm1, %v3344_v47 }
  0x39   : > { %429 = vmatprep.mubr.f32.mxu0 %v3186_v1  ;;  %477 = vmatprep.mubr.f32.mxu1 %v3186_v1 }
  0x3c   : > { %2303 = vmatmul.mubr.msk.f32.gmra.mrb[10].mxu0 %vm286_vm1, %v248_v48  ;;  %2311 = vmatmul.mubr.msk.f32.gmra.mrb[10].mxu1 %vm286_vm1, %v3353_v49 }
  0x3d   : > { %435 = vmatprep.mubr.f32.mxu0 %v3186_v1  ;;  %483 = vmatprep.mubr.f32.mxu1 %v3186_v1 }
  0x40   : > { %2304 = vmatmul.mubr.msk.f32.gmra.mrb[12].mxu0 %vm286_vm1, %v249_v50  ;;  %2312 = vmatmul.mubr.msk.f32.gmra.mrb[12].mxu1 %vm286_vm1, %v3362_v51 }
  0x41   : > { %441 = vmatprep.mubr.f32.mxu0 %v3186_v1  ;;  %489 = vmatprep.mubr.f32.mxu1 %v3186_v1 }
  0x44   : > { %2305 = vmatmul.mubr.msk.f32.gmra.mrb[14].mxu0 %vm286_vm1, %v250_v52  ;;  %2313 = vmatmul.mubr.msk.f32.gmra.mrb[14].mxu1 %vm286_vm1, %v3371_v53 }
  0x45   : > { %721 = vmatprep.mubr.f32.mxu0 %v3186_v1  ;;  %560 = vmatprep.mubr.f32.mxu1 %v3186_v1 }
  0x48   : > { %2330 = vmatmul.mubr.msk.f32.vlgmr.msra.gmra.mrb[16].mxu0 %vm286_vm1, %v3294_v21  ;;  %2314 = vmatmul.mubr.msk.f32.vlgmr.msra.gmra.mrb[16].mxu1 %vm286_vm1, %v3294_v21 }
  0x49   : > { %727 = vmatprep.mubr.f32.mxu0 %v3186_v1  ;;  %566 = vmatprep.mubr.f32.mxu1 %v3186_v1 }
  0x4c   : > { %2331 = vmatmul.mubr.msk.f32.gmra.mrb[18].mxu0 %vm286_vm1, %v244_v37  ;;  %2315 = vmatmul.mubr.msk.f32.gmra.mrb[18].mxu1 %vm286_vm1, %v244_v37 }
  0x4d   : > { %733 = vmatprep.mubr.f32.mxu0 %v3186_v1  ;;  %572 = vmatprep.mubr.f32.mxu1 %v3186_v1 }
  0x50   : > { %2332 = vmatmul.mubr.msk.f32.gmra.mrb[20].mxu0 %vm286_vm1, %v245_v42  ;;  %2316 = vmatmul.mubr.msk.f32.gmra.mrb[20].mxu1 %vm286_vm1, %v245_v42 }
  0x51   : > { %739 = vmatprep.mubr.f32.mxu0 %v3186_v1  ;;  %578 = vmatprep.mubr.f32.mxu1 %v3186_v1 }
  0x54   : > { %2333 = vmatmul.mubr.msk.f32.gmra.mrb[22].mxu0 %vm286_vm1, %v246_v44  ;;  %2317 = vmatmul.mubr.msk.f32.gmra.mrb[22].mxu1 %vm286_vm1, %v246_v44 }
  0x55   : > { %745 = vmatprep.mubr.f32.mxu0 %v3186_v1  ;;  %584 = vmatprep.mubr.f32.mxu1 %v3186_v1 }
  0x58   : > { %2334 = vmatmul.mubr.msk.f32.gmra.mrb[24].mxu0 %vm286_vm1, %v247_v46  ;;  %2318 = vmatmul.mubr.msk.f32.gmra.mrb[24].mxu1 %vm286_vm1, %v247_v46 }
  0x59   : > { %751 = vmatprep.mubr.f32.mxu0 %v3186_v1  ;;  %590 = vmatprep.mubr.f32.mxu1 %v3186_v1 }
  0x5c   : > { %2335 = vmatmul.mubr.msk.f32.gmra.mrb[26].mxu0 %vm286_vm1, %v248_v48  ;;  %2319 = vmatmul.mubr.msk.f32.gmra.mrb[26].mxu1 %vm286_vm1, %v248_v48 }
  0x5d   : > { %757 = vmatprep.mubr.f32.mxu0 %v3186_v1  ;;  %596 = vmatprep.mubr.f32.mxu1 %v3186_v1 }
  0x60   : > { %2336 = vmatmul.mubr.msk.f32.gmra.mrb[28].mxu0 %vm286_vm1, %v249_v50  ;;  %2320 = vmatmul.mubr.msk.f32.gmra.mrb[28].mxu1 %vm286_vm1, %v249_v50 }
  0x61   : > { %763 = vmatprep.mubr.f32.mxu0 %v3186_v1  ;;  %602 = vmatprep.mubr.f32.mxu1 %v3186_v1 }
  0x64   : > { %2337 = vmatmul.mubr.msk.f32.gmra.mrb[30].mxu0 %vm286_vm1, %v250_v52  ;;  %2321 = vmatmul.mubr.msk.f32.gmra.mrb[30].mxu1 %vm286_vm1, %v250_v52 }
  0x65   : > { %769 = vmatprep.mubr.f32.mxu0 %v3186_v1  ;;  %608 = vmatprep.mubr.f32.mxu1 %v3186_v1 }
  0x68   : > { %2338 = vmatmul.mubr.msk.f32.gmra.mrb[32].mxu0 %vm286_vm1, %v3299_v24  ;;  %2322 = vmatmul.mubr.msk.f32.gmra.mrb[32].mxu1 %vm286_vm1, %v3299_v24 }
  0x69   : > { %775 = vmatprep.mubr.f32.mxu0 %v3186_v1  ;;  %614 = vmatprep.mubr.f32.mxu1 %v3186_v1 }
  0x6c   : > { %2339 = vmatmul.mubr.msk.f32.gmra.mrb[34].mxu0 %vm286_vm1, %v3316_v38  ;;  %2323 = vmatmul.mubr.msk.f32.gmra.mrb[34].mxu1 %vm286_vm1, %v3316_v38 }
  0x6d   : > { %781 = vmatprep.mubr.f32.mxu0 %v3186_v1  ;;  %620 = vmatprep.mubr.f32.mxu1 %v3186_v1 }
  0x70   : > { %2340 = vmatmul.mubr.msk.f32.gmra.mrb[36].mxu0 %vm286_vm1, %v3326_v43  ;;  %2324 = vmatmul.mubr.msk.f32.gmra.mrb[36].mxu1 %vm286_vm1, %v3326_v43 }
  0x71   : > { %787 = vmatprep.mubr.f32.mxu0 %v3186_v1  ;;  %626 = vmatprep.mubr.f32.mxu1 %v3186_v1 }
  0x74   : > { %2341 = vmatmul.mubr.msk.f32.gmra.mrb[38].mxu0 %vm286_vm1, %v3335_v45  ;;  %2325 = vmatmul.mubr.msk.f32.gmra.mrb[38].mxu1 %vm286_vm1, %v3335_v45 }
  0x75   : > { %793 = vmatprep.mubr.f32.mxu0 %v3186_v1  ;;  %632 = vmatprep.mubr.f32.mxu1 %v3186_v1 }
  0x78   : > { %2342 = vmatmul.mubr.msk.f32.gmra.mrb[40].mxu0 %vm286_vm1, %v3344_v47  ;;  %2326 = vmatmul.mubr.msk.f32.gmra.mrb[40].mxu1 %vm286_vm1, %v3344_v47 }
  0x79   : > { %799 = vmatprep.mubr.f32.mxu0 %v3186_v1  ;;  %638 = vmatprep.mubr.f32.mxu1 %v3186_v1 }
  0x7c   : > { %2343 = vmatmul.mubr.msk.f32.gmra.mrb[42].mxu0 %vm286_vm1, %v3353_v49  ;;  %2327 = vmatmul.mubr.msk.f32.gmra.mrb[42].mxu1 %vm286_vm1, %v3353_v49 }
  0x7d   : > { %805 = vmatprep.mubr.f32.mxu0 %v3186_v1  ;;  %644 = vmatprep.mubr.f32.mxu1 %v3186_v1 }
  0x80   : > { %2344 = vmatmul.mubr.msk.f32.gmra.mrb[44].mxu0 %vm286_vm1, %v3362_v51  ;;  %2328 = vmatmul.mubr.msk.f32.gmra.mrb[44].mxu1 %vm286_vm1, %v3362_v51 }
  0x81   : > { %811 = vmatprep.mubr.f32.mxu0 %v3186_v1  ;;  %650 = vmatprep.mubr.f32.mxu1 %v3186_v1 }
  0x84   : > { %2345 = vmatmul.mubr.msk.f32.gmra.mrb[46].mxu0 %vm286_vm1, %v3371_v53  ;;  %2329 = vmatmul.mubr.msk.f32.gmra.mrb[46].mxu1 %vm286_vm1, %v3371_v53 }
  0xfb   : > { %v401_v54 = vpop.f32.mrb[0].mxu0  ;;  %v3458_v55 = vpop.f32.mrb[0].mxu1 }
  0xfc   : > { %v403_v56 = vpop.f32.mrb[1].mxu0  ;;  %2595 = vmatprep.mubr.f32.mxu1 %v401_v54  ;;  %v451_v57 = vpop.f32.mrb[1].mxu1 }
  0xff   : > { %v3460_v58 = vpop.f32.mrb[2].mxu0  ;;  %v3462_v59 = vpop.f32.mrb[2].mxu1 }
 0x100   : > { %v409_v60 = vpop.f32.mrb[3].mxu0  ;;  %v457_v61 = vpop.f32.mrb[3].mxu1 }
 0x101   : > { %v2811_v62 = vpack.c.bf16 %v409_v60, %v403_v56  ;;  %v2827_v63 = vpack.c.bf16 %v457_v61, %v451_v57 }
 0x103   : > { %v3464_v0 = vpop.f32.mrb[4].mxu0  ;;  %2812 = vmatprep.subr.bf16.mxu1 %v2811_v62  ;;  %v3466_v1 = vpop.f32.mrb[4].mxu1 }
 0x104   : > { %v415_v2 = vpop.f32.mrb[5].mxu0  ;;  %2814 = vmatpush3.bf16.xpose.msra.mxu1 %v2811_v62  ;;  %v463_v3 = vpop.f32.mrb[5].mxu1 }
 0x107   : > { %v3468_v4 = vpop.f32.mrb[6].mxu0  ;;  %v3470_v5 = vpop.f32.mrb[6].mxu1 }
 0x108   : > { %v421_v6 = vpop.f32.mrb[7].mxu0  ;;  %v469_v7 = vpop.f32.mrb[7].mxu1 }
 0x109   : > { %v2815_v8 = vpack.c.bf16 %v421_v6, %v415_v2  ;;  %v2831_v9 = vpack.c.bf16 %v469_v7, %v463_v3 }
 0x10b   : > { %v3472_v10 = vpop.f32.mrb[8].mxu0  ;;  %2816 = vmatprep.subr.bf16.mxu1 %v2815_v8  ;;  %v3474_v11 = vpop.f32.mrb[8].mxu1 }
 0x10c   : > { %v427_v12 = vpop.f32.mrb[9].mxu0  ;;  %2818 = vmatpush3.bf16.xpose.msra.mxu1 %v2815_v8  ;;  %v475_v13 = vpop.f32.mrb[9].mxu1 }
 0x10f   : > { %v3476_v14 = vpop.f32.mrb[10].mxu0  ;;  %v3478_v15 = vpop.f32.mrb[10].mxu1 }
 0x110   : > { %v433_v16 = vpop.f32.mrb[11].mxu0  ;;  %v481_v17 = vpop.f32.mrb[11].mxu1 }
 0x111   : > { %v2819_v18 = vpack.c.bf16 %v433_v16, %v427_v12  ;;  %v2835_v19 = vpack.c.bf16 %v481_v17, %v475_v13 }
 0x113   : > { %v3480_v20 = vpop.f32.mrb[12].mxu0  ;;  %2820 = vmatprep.subr.bf16.mxu1 %v2819_v18  ;;  %v3482_v21 = vpop.f32.mrb[12].mxu1 }
 0x114   : > { %v439_v22 = vpop.f32.mrb[13].mxu0  ;;  %2822 = vmatpush3.bf16.xpose.msra.mxu1 %v2819_v18  ;;  %v487_v23 = vpop.f32.mrb[13].mxu1 }
 0x117   : > { %v3484_v24 = vpop.f32.mrb[14].mxu0  ;;  %v3486_v25 = vpop.f32.mrb[14].mxu1 }
 0x118   : > { %v445_v26 = vpop.f32.mrb[15].mxu0  ;;  %v493_v27 = vpop.f32.mrb[15].mxu1 }
 0x119   : > { %v2823_v28 = vpack.c.bf16 %v445_v26, %v439_v22  ;;  %v3488_v29 = vpack.c.bf16 %v493_v27, %v487_v23 }
 0x11b   : > { %2824 = vmatprep.subr.bf16.mxu1 %v2823_v28  ;;  %v723_v30 = vpop.f32.mrb[16].mxu0  ;;  %v562_v31 = vpop.f32.mrb[16].mxu1 }
 0x11c   : > { %2826 = vmatpush3.bf16.xpose.msra.mxu1 %v2823_v28  ;;  %v725_v32 = vpop.f32.mrb[17].mxu0  ;;  %v564_v33 = vpop.f32.mrb[17].mxu1 }
 0x11d   : > { %2828 = vmatprep.subr.bf16.mxu1 %v2827_v63  ;;  %2707 = vmatprep.mubr.f32.mxu0 %v564_v33 }
 0x11f   : > { %v729_v34 = vpop.f32.mrb[18].mxu0  ;;  %v568_v35 = vpop.f32.mrb[18].mxu1 }
 0x120   : > { %v2875_v36 = vpack.c.bf16 %v729_v34, %v723_v30  ;;  %v731_v37 = vpop.f32.mrb[19].mxu0  ;;  %v3490_v38 = vpack.c.bf16 %v568_v35, %v562_v31  ;;  %v3492_v39 = vpop.f32.mrb[19].mxu1 }
 0x121   : > { %v3494_v40 = vpack.c.bf16 %v731_v37, %v725_v32 }
 0x122   : > { %2876 = vmatprep.subr.bf16.mxu0 %v2875_v36 }
 0x123   : > { %2878 = vmatpush3.bf16.xpose.msra.mxu0 %v2875_v36  ;;  %v735_v41 = vpop.f32.mrb[20].mxu0  ;;  %v574_v42 = vpop.f32.mrb[20].mxu1 }
 0x124   : > { %2830 = vmatpush3.bf16.xpose.msra.mxu1 %v2827_v63  ;;  %v737_v43 = vpop.f32.mrb[21].mxu0  ;;  %v3496_v44 = vpop.f32.mrb[21].mxu1 }
 0x125   : > { %2832 = vmatprep.subr.bf16.mxu1 %v2831_v9 }
 0x127   : > { %v741_v45 = vpop.f32.mrb[22].mxu0  ;;  %v580_v46 = vpop.f32.mrb[22].mxu1 }
 0x128   : > { %v2879_v47 = vpack.c.bf16 %v741_v45, %v735_v41  ;;  %v743_v48 = vpop.f32.mrb[23].mxu0  ;;  %v3498_v49 = vpack.c.bf16 %v580_v46, %v574_v42  ;;  %v3500_v50 = vpop.f32.mrb[23].mxu1 }
 0x129   : > { %v3502_v51 = vpack.c.bf16 %v743_v48, %v737_v43 }
 0x12a   : > { %2880 = vmatprep.subr.bf16.mxu0 %v2879_v47 }
 0x12b   : > { %2882 = vmatpush3.bf16.xpose.msra.mxu0 %v2879_v47  ;;  %v747_v52 = vpop.f32.mrb[24].mxu0  ;;  %v586_v53 = vpop.f32.mrb[24].mxu1 }
 0x12c   : > { %2834 = vmatpush3.bf16.xpose.msra.mxu1 %v2831_v9  ;;  %v749_v54 = vpop.f32.mrb[25].mxu0  ;;  %v3504_v56 = vpop.f32.mrb[25].mxu1 }
 0x12d   : > { %2836 = vmatprep.subr.bf16.mxu1 %v2835_v19 }
 0x12f   : > { %v753_v57 = vpop.f32.mrb[26].mxu0  ;;  %v592_v60 = vpop.f32.mrb[26].mxu1 }
 0x130   : > { %v2883_v61 = vpack.c.bf16 %v753_v57, %v747_v52  ;;  %v755_v62 = vpop.f32.mrb[27].mxu0  ;;  %v2851_v63 = vpack.c.bf16 %v592_v60, %v586_v53  ;;  %v3506_v2 = vpop.f32.mrb[27].mxu1 }
 0x131   : > { %v3508_v3 = vpack.c.bf16 %v755_v62, %v749_v54 }
 0x132   : > { %2884 = vmatprep.subr.bf16.mxu0 %v2883_v61 }
 0x133   : > { %2886 = vmatpush3.bf16.xpose.msra.mxu0 %v2883_v61  ;;  %v759_v6 = vpop.f32.mrb[28].mxu0  ;;  %v598_v7 = vpop.f32.mrb[28].mxu1 }
 0x134   : > { %2838 = vmatpush3.bf16.xpose.msra.mxu1 %v2835_v19  ;;  %v761_v8 = vpop.f32.mrb[29].mxu0  ;;  %v3510_v9 = vpop.f32.mrb[29].mxu1 }
 0x135   : > { %2840 = vmatprep.subr.bf16.mxu1 %v3488_v29 }
 0x137   : > { %v765_v12 = vpop.f32.mrb[30].mxu0  ;;  %v604_v13 = vpop.f32.mrb[30].mxu1 }
 0x138   : > { %v2887_v16 = vpack.c.bf16 %v765_v12, %v759_v6  ;;  %v767_v17 = vpop.f32.mrb[31].mxu0  ;;  %v2855_v18 = vpack.c.bf16 %v604_v13, %v598_v7  ;;  %v3513_v22 = vpop.f32.mrb[31].mxu1 }
 0x139   : > { %v3515_v23 = vpack.c.bf16 %v767_v17, %v761_v8 }
 0x13a   : > { %2888 = vmatprep.subr.bf16.mxu0 %v2887_v16 }
 0x13b   : > { %2890 = vmatpush3.bf16.xpose.msra.mxu0 %v2887_v16  ;;  %v771_v26 = vpop.f32.mrb[32].mxu0  ;;  %v610_v27 = vpop.f32.mrb[32].mxu1 }
 0x13c   : > { %2842 = vmatpush3.bf16.xpose.msra.mxu1 %v3488_v29  ;;  %v773_v19 = vpop.f32.mrb[33].mxu0  ;;  %v3518_v28 = vpop.f32.mrb[33].mxu1 }
 0x13d   : > { %2844 = vmatprep.subr.bf16.mxu1 %v3490_v38 }
 0x13f   : > { %v777_v30 = vpop.f32.mrb[34].mxu0  ;;  %v616_v31 = vpop.f32.mrb[34].mxu1 }
 0x140   : > { %v2891_v32 = vpack.c.bf16 %v777_v30, %v771_v26  ;;  %v779_v33 = vpop.f32.mrb[35].mxu0  ;;  %v2859_v34 = vpack.c.bf16 %v616_v31, %v610_v27  ;;  %v3521_v35 = vpop.f32.mrb[35].mxu1 }
 0x141   : > { %v3523_v36 = vpack.c.bf16 %v779_v33, %v773_v19 }
 0x142   : > { %2892 = vmatprep.subr.bf16.mxu0 %v2891_v32 }
 0x143   : > { %2596 = vmatmul.mubr.f32.vlgmr.msra.gmra.mrb[48].mxu1 %v3460_v58  ;;  %2894 = vmatpush3.bf16.xpose.msra.mxu0 %v2891_v32  ;;  %v783_v37 = vpop.f32.mrb[36].mxu0  ;;  %v622_v29 = vpop.f32.mrb[36].mxu1 }
 0x144   : > { %2598 = vmatprep.mubr.f32.mxu1 %v3464_v0  ;;  %2846 = vmatpush3.bf16.msra.mxu1 %v3490_v38  ;;  %v785_v41 = vpop.f32.mrb[37].mxu0  ;;  %v3528_v42 = vpop.f32.mrb[37].mxu1 }
 0x145   : > { %2848 = vmatprep.subr.bf16.mxu1 %v3498_v49 }
 0x147   : > { %v789_v43 = vpop.f32.mrb[38].mxu0  ;;  %2599 = vmatmul.mubr.f32.gmra.mrb[50].mxu1 %v3468_v4  ;;  %v628_v45 = vpop.f32.mrb[38].mxu1 }
 0x148   : > { %v2895_v46 = vpack.c.bf16 %v789_v43, %v783_v37  ;;  %v791_v47 = vpop.f32.mrb[39].mxu0  ;;  %2601 = vmatprep.mubr.f32.mxu1 %v3472_v10  ;;  %2850 = vmatpush3.bf16.msra.mxu1 %v3498_v49  ;;  %v2863_v58 = vpack.c.bf16 %v628_v45, %v622_v29  ;;  %v3534_v48 = vpop.f32.mrb[39].mxu1 }
 0x149   : > { %v3536_v0 = vpack.c.bf16 %v791_v47, %v785_v41  ;;  %2852 = vmatprep.subr.bf16.mxu1 %v2851_v63 }
 0x14a   : > { %2896 = vmatprep.subr.bf16.mxu0 %v2895_v46 }
 0x14b   : > { %2602 = vmatmul.mubr.f32.gmra.mrb[52].mxu1 %v3476_v14  ;;  %2898 = vmatpush3.bf16.xpose.msra.mxu0 %v2895_v46  ;;  %v795_v38 = vpop.f32.mrb[40].mxu0  ;;  %v634_v52 = vpop.f32.mrb[40].mxu1 }
 0x14c   : > { %2604 = vmatprep.mubr.f32.mxu1 %v3480_v20  ;;  %2854 = vmatpush3.bf16.msra.mxu1 %v2851_v63  ;;  %v797_v4 = vpop.f32.mrb[41].mxu0  ;;  %v636_v53 = vpop.f32.mrb[41].mxu1 }
 0x14d   : > { %2856 = vmatprep.subr.bf16.mxu1 %v2855_v18 }
 0x14f   : > { %v801_v10 = vpop.f32.mrb[42].mxu0  ;;  %2605 = vmatmul.mubr.f32.gmra.mrb[54].mxu1 %v3484_v24  ;;  %v640_v49 = vpop.f32.mrb[42].mxu1 }
 0x150   : > { %v2899_v54 = vpack.c.bf16 %v801_v10, %v795_v38  ;;  %v803_v57 = vpop.f32.mrb[43].mxu0  ;;  %2607 = vmatprep.mubr.f32.mxu1 %v3458_v55  ;;  %2858 = vmatpush3.bf16.msra.mxu1 %v2855_v18  ;;  %v2867_v60 = vpack.c.bf16 %v640_v49, %v634_v52  ;;  %v642_v14 = vpop.f32.mrb[43].mxu1 }
 0x151   : > { %v3542_v61 = vpack.c.bf16 %v803_v57, %v797_v4  ;;  %2860 = vmatprep.subr.bf16.mxu1 %v2859_v34 }
 0x152   : > { %2900 = vmatprep.subr.bf16.mxu0 %v2899_v54 }
 0x153   : > { %2608 = vmatmul.mubr.f32.gmra.mrb[56].mxu1 %v3462_v59  ;;  %2902 = vmatpush3.bf16.xpose.msra.mxu0 %v2899_v54  ;;  %v807_v20 = vpop.f32.mrb[44].mxu0  ;;  %v646_v62 = vpop.f32.mrb[44].mxu1 }
 0x154   : > { %2610 = vmatprep.mubr.f32.mxu1 %v3466_v1  ;;  %2862 = vmatpush3.bf16.msra.mxu1 %v2859_v34  ;;  %v809_v24 = vpop.f32.mrb[45].mxu0  ;;  %v648_v63 = vpop.f32.mrb[45].mxu1  ;;  %v1113_v1 = vlaneseq }
 0x155   : > { %2864 = vmatprep.subr.bf16.mxu1 %v2863_v58 }
 0x157   : > { %v813_v6 = vpop.f32.mrb[46].mxu0  ;;  %2611 = vmatmul.mubr.f32.gmra.mrb[58].mxu1 %v3470_v5  ;;  %v652_v55 = vpop.f32.mrb[46].mxu1  ;;  %v3565_v5 = vand.u32 127, %v1113_v1 }
 0x158   : > { %v2903_v7 = vpack.c.bf16 %v813_v6, %v807_v20  ;;  %v815_v8 = vpop.f32.mrb[47].mxu0  ;;  %2613 = vmatprep.mubr.f32.mxu1 %v3474_v11  ;;  %2866 = vmatpush3.bf16.msra.mxu1 %v2863_v58  ;;  %v2871_v12 = vpack.c.bf16 %v652_v55, %v646_v62  ;;  %v654_v59 = vpop.f32.mrb[47].mxu1 }
 0x159   : > { %v3548_v13 = vpack.c.bf16 %v815_v8, %v809_v24  ;;  %2868 = vmatprep.subr.bf16.mxu1 %v2867_v60  ;;  %vm1115_vm2 = vcmp.lt.s32.totalorder %v3565_v5, 8 }
 0x15a   : > { %2904 = vmatprep.subr.bf16.mxu0 %v2903_v7 }
 0x15b   : > { %2614 = vmatmul.mubr.f32.gmra.mrb[60].mxu1 %v3478_v15  ;;  %2906 = vmatpush3.bf16.xpose.msra.mxu0 %v2903_v7 }
 0x15c   : > { %2616 = vmatprep.mubr.f32.mxu1 %v3482_v21  ;;  %2870 = vmatpush3.bf16.msra.mxu1 %v2867_v60 }
 0x15d   : > { %2872 = vmatprep.subr.bf16.mxu1 %v2871_v12 }
 0x15f   : > { %2617 = vmatmul.mubr.f32.gmra.mrb[62].mxu1 %v3486_v25 }
 0x160   : > { %2874 = vmatpush3.bf16.msra.mxu1 %v2871_v12 }
 0x161   : > { %2908 = vmatprep.subr.bf16.mxu1 %v3494_v40 }
 0x162   : > { %2708 = vmatmul.mubr.f32.vlgmr.msra.gmra.mrb[48].mxu0 %v3492_v39 }
 0x163   : > { %2710 = vmatprep.mubr.f32.mxu0 %v3496_v44 }
 0x166   : > { %2711 = vmatmul.mubr.f32.gmra.mrb[50].mxu0 %v3500_v50 }
 0x167   : > { %2713 = vmatprep.mubr.f32.mxu0 %v3504_v56 }
 0x16a   : > { %2714 = vmatmul.mubr.f32.gmra.mrb[52].mxu0 %v3506_v2 }
 0x16b   : > { %2716 = vmatprep.mubr.f32.mxu0 %v3510_v9 }
 0x16e   : > { %2717 = vmatmul.mubr.f32.gmra.mrb[54].mxu0 %v3513_v22 }
 0x16f   : > { %2719 = vmatprep.mubr.f32.mxu0 %v3518_v28 }
 0x172   : > { %2720 = vmatmul.mubr.f32.gmra.mrb[56].mxu0 %v3521_v35 }
 0x173   : > { %2722 = vmatprep.mubr.f32.mxu0 %v3528_v42 }
 0x176   : > { %2723 = vmatmul.mubr.f32.gmra.mrb[58].mxu0 %v3534_v48 }
 0x177   : > { %2725 = vmatprep.mubr.f32.mxu0 %v636_v53 }
 0x17a   : > { %2726 = vmatmul.mubr.f32.gmra.mrb[60].mxu0 %v642_v14 }
 0x17b   : > { %2728 = vmatprep.mubr.f32.mxu0 %v648_v63 }
 0x17e   : > { %2729 = vmatmul.mubr.f32.gmra.mrb[62].mxu0 %v654_v59 }
 0x216   : > { %v2597_v11 = vpop.f32.mrb[48].mxu1 }
 0x217   : > { %v1034_v15 = vpop.f32.mrb[49].mxu1  ;;  %v3575_v44 = vsel %vm1115_vm2, %v2597_v11, -1e+30 }
 0x218   : > { %v3570_v21 = vsel %vm1115_vm2, %v1034_v15, -1e+30 }
 0x219   : > { %1132 = vmax.xlane.f32.xlu0 %v3570_v21 }
 0x21a   : > { %v2600_v25 = vpop.f32.mrb[50].mxu1 }
 0x21b   : > { %v1044_v39 = vpop.f32.mrb[51].mxu1  ;;  %v3585_v9 = vsel %vm1115_vm2, %v2600_v25, -1e+30 }
 0x21c   : > { %v3579_v50 = vsel %vm1115_vm2, %v1044_v39, -1e+30 }
 0x21d   : > { %1134 = vmax.xlane.f32.xlu0 %v3575_v44  ;;  %1136 = vmax.xlane.f32.xlu1 %v3579_v50 }
 0x21e   : > { %v2603_v56 = vpop.f32.mrb[52].mxu1 }
 0x21f   : > { %v1054_v2 = vpop.f32.mrb[53].mxu1  ;;  %v3595_v22 = vsel %vm1115_vm2, %v2603_v56, -1e+30 }
 0x220   : > { %v3589_v16 = vsel %vm1115_vm2, %v1054_v2, -1e+30 }
 0x221   : > { %1138 = vmax.xlane.f32.xlu1 %v3585_v9  ;;  %1140 = vmax.xlane.f32.xlu0 %v3589_v16 }
 0x222   : > { %v2606_v17 = vpop.f32.mrb[54].mxu1 }
 0x223   : > { %v1064_v18 = vpop.f32.mrb[55].mxu1  ;;  %v3605_v28 = vsel %vm1115_vm2, %v2606_v17, -1e+30 }
 0x224   : > { %v3599_v26 = vsel %vm1115_vm2, %v1064_v18, -1e+30 }
 0x225   : > { %1142 = vmax.xlane.f32.xlu1 %v3595_v22  ;;  %1144 = vmax.xlane.f32.xlu0 %v3599_v26 }
 0x226   : > { %v2609_v27 = vpop.f32.mrb[56].mxu1 }
 0x227   : > { %v1074_v19 = vpop.f32.mrb[57].mxu1  ;;  %v3615_v33 = vsel %vm1115_vm2, %v2609_v27, -1e+30 }
 0x228   : > { %v3609_v30 = vsel %vm1115_vm2, %v1074_v19, -1e+30 }
 0x229   : > { %1146 = vmax.xlane.f32.xlu1 %v3605_v28  ;;  %1148 = vmax.xlane.f32.xlu0 %v3609_v30 }
 0x22a   : > { %v2612_v31 = vpop.f32.mrb[58].mxu1 }
 0x22b   : > { %v1084_v32 = vpop.f32.mrb[59].mxu1  ;;  %v3625_v29 = vsel %vm1115_vm2, %v2612_v31, -1e+30 }
 0x22c   : > { %v3619_v34 = vsel %vm1115_vm2, %v1084_v32, -1e+30 }
 0x22d   : > { %1150 = vmax.xlane.f32.xlu1 %v3615_v33  ;;  %1152 = vmax.xlane.f32.xlu0 %v3619_v34 }
 0x22e   : > { %v2615_v35 = vpop.f32.mrb[60].mxu1 }
 0x22f   : > { %v1094_v37 = vpop.f32.mrb[61].mxu1  ;;  %v3635_v45 = vsel %vm1115_vm2, %v2615_v35, -1e+30 }
 0x230   : > { %v3629_v41 = vsel %vm1115_vm2, %v1094_v37, -1e+30 }
 0x231   : > { %1154 = vmax.xlane.f32.xlu1 %v3625_v29  ;;  %1156 = vmax.xlane.f32.xlu0 %v3629_v41 }
 0x232   : > { %v2618_v42 = vpop.f32.mrb[62].mxu1 }
 0x233   : > { %v1104_v43 = vpop.f32.mrb[63].mxu1  ;;  %v3649_v38 = vsel %vm1115_vm2, %v2618_v42, -1e+30 }
 0x234   : > { %v3639_v46 = vsel %vm1115_vm2, %v1104_v43, -1e+30 }
 0x235   : > { %1158 = vmax.xlane.f32.xlu1 %v3635_v45  ;;  %1160 = vmax.xlane.f32.xlu0 %v3639_v46  ;;  %v2709_v47 = vpop.f32.mrb[48].mxu0 }
 0x236   : > { %v1535_v58 = vpop.f32.mrb[49].mxu0  ;;  %v3659_v10 = vsel %vm1115_vm2, %v2709_v47, -1e+30 }
 0x237   : > { %v3645_v48 = vsel %vm1115_vm2, %v1535_v58, -1e+30 }
 0x239   : > { %1162 = vmax.xlane.f32.xlu1 %v3649_v38  ;;  %1630 = vmax.xlane.f32.xlu0 %v3645_v48  ;;  %v2712_v52 = vpop.f32.mrb[50].mxu0 }
 0x23a   : > { %v1545_v4 = vpop.f32.mrb[51].mxu0  ;;  %v3665_v57 = vsel %vm1115_vm2, %v2712_v52, -1e+30 }
 0x23b   : > { %v3655_v53 = vsel %vm1115_vm2, %v1545_v4, -1e+30 }
 0x23d   : > { %1632 = vmax.xlane.f32.xlu1 %v3659_v10  ;;  %1634 = vmax.xlane.f32.xlu0 %v3655_v53  ;;  %v2715_v49 = vpop.f32.mrb[52].mxu0 }
 0x23e   : > { %v1555_v54 = vpop.f32.mrb[53].mxu0  ;;  %v3675_v62 = vsel %vm1115_vm2, %v2715_v49, -1e+30 }
 0x23f   : > { %v3669_v60 = vsel %vm1115_vm2, %v1555_v54, -1e+30 }
 0x241   : > { %1636 = vmax.xlane.f32.xlu1 %v3665_v57  ;;  %1638 = vmax.xlane.f32.xlu0 %v3669_v60  ;;  %v2718_v14 = vpop.f32.mrb[54].mxu0 }
 0x242   : > { %v1565_v20 = vpop.f32.mrb[55].mxu0  ;;  %v3685_v55 = vsel %vm1115_vm2, %v2718_v14, -1e+30 }
 0x243   : > { %v3679_v24 = vsel %vm1115_vm2, %v1565_v20, -1e+30 }
 0x245   : > { %1640 = vmax.xlane.f32.xlu1 %v3675_v62  ;;  %1642 = vmax.xlane.f32.xlu0 %v3679_v24  ;;  %v2721_v63 = vpop.f32.mrb[56].mxu0 }
 0x246   : > { %v1575_v6 = vpop.f32.mrb[57].mxu0  ;;  %v3695_v59 = vsel %vm1115_vm2, %v2721_v63, -1e+30 }
 0x247   : > { %v3689_v7 = vsel %vm1115_vm2, %v1575_v6, -1e+30 }
 0x249   : > { %1644 = vmax.xlane.f32.xlu1 %v3685_v55  ;;  %1646 = vmax.xlane.f32.xlu0 %v3689_v7  ;;  %v2724_v8 = vpop.f32.mrb[58].mxu0 }
 0x24a   : > { %v1585_v12 = vpop.f32.mrb[59].mxu0  ;;  %v3705_v25 = vsel %vm1115_vm2, %v2724_v8, -1e+30 }
 0x24b   : > { %v3699_v1 = vsel %vm1115_vm2, %v1585_v12, -1e+30 }
 0x24d   : > { %1648 = vmax.xlane.f32.xlu1 %v3695_v59  ;;  %1650 = vmax.xlane.f32.xlu0 %v3699_v1  ;;  %v2727_v11 = vpop.f32.mrb[60].mxu0 }
 0x24e   : > { %v1595_v15 = vpop.f32.mrb[61].mxu0  ;;  %v3715_v17 = vsel %vm1115_vm2, %v2727_v11, -1e+30 }
 0x24f   : > { %v3709_v39 = vsel %vm1115_vm2, %v1595_v15, -1e+30 }
 0x251   : > { %1652 = vmax.xlane.f32.xlu1 %v3705_v25  ;;  %1654 = vmax.xlane.f32.xlu0 %v3709_v39  ;;  %v2730_v56 = vpop.f32.mrb[62].mxu0 }
 0x252   : > { %v1605_v2 = vpop.f32.mrb[63].mxu0  ;;  %v3719_v18 = vsel %vm1115_vm2, %v2730_v56, -1e+30 }
 0x253   : > { %v3723_v27 = vsel %vm1115_vm2, %v1605_v2, -1e+30 }
 0x255   : > { %1656 = vmax.xlane.f32.xlu1 %v3715_v17  ;;  %1658 = vmax.xlane.f32.xlu0 %v3723_v27 }
 0x259   : > { %1660 = vmax.xlane.f32.xlu1 %v3719_v18 }
 0x2a6   : > { %v1133_v19 = vpop.xlane.xlu0 %1132 }
 0x2a7   : > { %v1164_v31 = vsub.f32 %v3570_v21, %v1133_v19 }
 0x2a9   : > { %v1180_v32 = vmul.f32 1.442695, %v1164_v31 }
 0x2aa   : > { %v1135_v35 = vpop.xlane.xlu0 %1134  ;;  %v1137_v37 = vpop.xlane.xlu1 %1136 }
 0x2ab   : > { %3017 = vpow2.f32 %v1180_v32  ;;  %v1165_v42 = vsub.f32 %v3575_v44, %v1135_v35  ;;  %v1166_v43 = vsub.f32 %v3579_v50, %v1137_v37 }
 0x2ad   : > { %v1182_v5 = vmul.f32 1.442695, %v1165_v42  ;;  %v1184_v47 = vmul.f32 1.442695, %v1166_v43 }
 0x2ae   : > { %v1139_v58 = vpop.xlane.xlu1 %1138  ;;  %v1141_v52 = vpop.xlane.xlu0 %1140 }
 0x2af   : > { %3019 = vpow2.f32 %v1182_v5  ;;  %v1167_v4 = vsub.f32 %v3585_v9, %v1139_v58  ;;  %v1168_v49 = vsub.f32 %v3589_v16, %v1141_v52 }
 0x2b0   : > { %3021 = vpow2.f32 %v1184_v47 }
 0x2b1   : > { %v1186_v54 = vmul.f32 1.442695, %v1167_v4  ;;  %v1188_v21 = vmul.f32 1.442695, %v1168_v49 }
 0x2b2   : > { %v1143_v14 = vpop.xlane.xlu1 %1142  ;;  %v1145_v20 = vpop.xlane.xlu0 %1144 }
 0x2b3   : > { %3023 = vpow2.f32 %v1186_v54  ;;  %v1169_v63 = vsub.f32 %v3595_v22, %v1143_v14  ;;  %v1170_v44 = vsub.f32 %v3599_v26, %v1145_v20 }
 0x2b4   : > { %3025 = vpow2.f32 %v1188_v21 }
 0x2b5   : > { %v3018_v50 = vpop.eup %3017  ;;  %v1190_v6 = vmul.f32 1.442695, %v1169_v63  ;;  %v1192_v8 = vmul.f32 1.442695, %v1170_v44 }
 0x2b6   : > { %2651 = vmatprep.mubr.f32.mxu1 %v3018_v50  ;;  %v1147_v12 = vpop.xlane.xlu1 %1146  ;;  %v1149_v11 = vpop.xlane.xlu0 %1148  ;;  %1212 = vadd.xlane.f32.xlu1 %v3018_v50 }
 0x2b7   : > { %3027 = vpow2.f32 %v1190_v6  ;;  %v1171_v9 = vsub.f32 %v3605_v28, %v1147_v12  ;;  %v1172_v16 = vsub.f32 %v3609_v30, %v1149_v11 }
 0x2b8   : > { %3029 = vpow2.f32 %v1192_v8 }
 0x2b9   : > { %v3020_v15 = vpop.eup %3019  ;;  %v1194_v56 = vmul.f32 1.442695, %v1171_v9  ;;  %v1196_v2 = vmul.f32 1.442695, %v1172_v16 }
 0x2ba   : > { %v3022_v22 = vpop.eup %3021  ;;  %2652 = vmatmul.mubr.f32.vlgmr.msra.gmra.mrb[64].mxu1 %v3020_v15  ;;  %v1151_v26 = vpop.xlane.xlu1 %1150  ;;  %1214 = vadd.xlane.f32.xlu1 %v3020_v15 }
 0x2bb   : > { %v1153_v19 = vpop.xlane.xlu0 %1152  ;;  %3031 = vpow2.f32 %v1194_v56  ;;  %v1173_v31 = vsub.f32 %v3615_v33, %v1151_v26  ;;  %2910 = vmatpush3.bf16.msra.mxu1 %v3494_v40  ;;  %2654 = vmatprep.mubr.f32.mxu1 %v3022_v22 }
 0x2bc   : > { %v1174_v32 = vsub.f32 %v3619_v34, %v1153_v19  ;;  %3033 = vpow2.f32 %v1196_v2  ;;  %2912 = vmatprep.subr.bf16.mxu1 %v3502_v51 }
 0x2bd   : > { %v3024_v28 = vpop.eup %3023  ;;  %v1198_v30 = vmul.f32 1.442695, %v1173_v31 }
 0x2be   : > { %v1200_v35 = vmul.f32 1.442695, %v1174_v32  ;;  %v3026_v37 = vpop.eup %3025  ;;  %2655 = vmatmul.mubr.f32.gmra.mrb[66].mxu1 %v3024_v28  ;;  %v1155_v42 = vpop.xlane.xlu1 %1154  ;;  %1216 = vadd.xlane.f32.xlu1 %v3022_v22 }
 0x2bf   : > { %v1157_v43 = vpop.xlane.xlu0 %1156  ;;  %3035 = vpow2.f32 %v1198_v30  ;;  %v1175_v5 = vsub.f32 %v3625_v29, %v1155_v42  ;;  %2914 = vmatpush3.bf16.msra.mxu1 %v3502_v51  ;;  %2657 = vmatprep.mubr.f32.mxu1 %v3026_v37 }
 0x2c0   : > { %v1176_v33 = vsub.f32 %v3629_v41, %v1157_v43  ;;  %3037 = vpow2.f32 %v1200_v35  ;;  %2916 = vmatprep.subr.bf16.mxu1 %v3508_v3 }
 0x2c1   : > { %v3028_v40 = vpop.eup %3027  ;;  %v1202_v34 = vmul.f32 1.442695, %v1175_v5 }
 0x2c2   : > { %v1204_v47 = vmul.f32 1.442695, %v1176_v33  ;;  %v3030_v58 = vpop.eup %3029  ;;  %2658 = vmatmul.mubr.f32.gmra.mrb[68].mxu1 %v3028_v40  ;;  %v1159_v52 = vpop.xlane.xlu1 %1158  ;;  %1218 = vadd.xlane.f32.xlu1 %v3024_v28 }
 0x2c3   : > { %v1161_v4 = vpop.xlane.xlu0 %1160  ;;  %3039 = vpow2.f32 %v1202_v34  ;;  %v1177_v49 = vsub.f32 %v3635_v45, %v1159_v52  ;;  %2918 = vmatpush3.bf16.msra.mxu1 %v3508_v3  ;;  %2660 = vmatprep.mubr.f32.mxu1 %v3030_v58 }
 0x2c4   : > { %v1178_v29 = vsub.f32 %v3639_v46, %v1161_v4  ;;  %3041 = vpow2.f32 %v1204_v47  ;;  %2920 = vmatprep.subr.bf16.mxu1 %v3515_v23 }
 0x2c5   : > { %v3032_v51 = vpop.eup %3031  ;;  %v1206_v41 = vmul.f32 1.442695, %v1177_v49 }
 0x2c6   : > { %v1208_v54 = vmul.f32 1.442695, %v1178_v29  ;;  %v3749_v21 = vpop.eup %3033  ;;  %2661 = vmatmul.mubr.f32.gmra.mrb[70].mxu1 %v3032_v51  ;;  %v1163_v14 = vpop.xlane.xlu1 %1162  ;;  %1220 = vadd.xlane.f32.xlu1 %v3026_v37 }
 0x2c7   : > { %v1631_v20 = vpop.xlane.xlu0 %1630  ;;  %3043 = vpow2.f32 %v1206_v41  ;;  %v1179_v45 = vsub.f32 %v3649_v38, %v1163_v14  ;;  %2922 = vmatpush3.bf16.msra.mxu1 %v3515_v23  ;;  %2663 = vmatprep.mubr.f32.mxu1 %v3749_v21 }
 0x2c8   : > { %v1662_v3 = vsub.f32 %v3645_v48, %v1631_v20  ;;  %3045 = vpow2.f32 %v1208_v54  ;;  %2924 = vmatprep.subr.bf16.mxu1 %v3523_v36 }
 0x2c9   : > { %v3756_v46 = vpop.eup %3035  ;;  %v1210_v63 = vmul.f32 1.442695, %v1179_v45 }
 0x2ca   : > { %v1678_v44 = vmul.f32 1.442695, %v1662_v3  ;;  %v3758_v50 = vpop.eup %3037  ;;  %2664 = vmatmul.mubr.f32.gmra.mrb[72].mxu1 %v3756_v46  ;;  %v1633_v6 = vpop.xlane.xlu1 %1632  ;;  %1222 = vadd.xlane.f32.xlu1 %v3028_v40 }
 0x2cb   : > { %v1635_v8 = vpop.xlane.xlu0 %1634  ;;  %3047 = vpow2.f32 %v1210_v63  ;;  %2926 = vmatpush3.bf16.msra.mxu1 %v3523_v36  ;;  %v1663_v23 = vsub.f32 %v3659_v10, %v1633_v6  ;;  %2666 = vmatprep.mubr.f32.mxu1 %v3758_v50 }
 0x2cc   : > { %v1664_v48 = vsub.f32 %v3655_v53, %v1635_v8  ;;  %3049 = vpow2.f32 %v1678_v44  ;;  %2928 = vmatprep.subr.bf16.mxu1 %v3536_v0 }
 0x2cd   : > { %v3766_v38 = vpop.eup %3039  ;;  %v1680_v12 = vmul.f32 1.442695, %v1663_v23  ;;  %v1954_v23 = vld [vmem:[%s3811_s10 + $0x80] sm:$0xff] }
 0x2ce   : > { %v1682_v11 = vmul.f32 1.442695, %v1664_v48  ;;  %v3768_v9 = vpop.eup %3041  ;;  %2667 = vmatmul.mubr.f32.gmra.mrb[74].mxu1 %v3766_v38  ;;  %v1637_v16 = vpop.xlane.xlu1 %1636  ;;  %1224 = vadd.xlane.f32.xlu1 %v3030_v58  ;;  %v1955_v48 = vld [vmem:[%s3811_s10 + $0x88] sm:$0xff] }
 0x2cf   : > { %v1639_v15 = vpop.xlane.xlu0 %1638  ;;  %3051 = vpow2.f32 %v1680_v12  ;;  %2930 = vmatpush3.bf16.msra.mxu1 %v3536_v0  ;;  %v1665_v36 = vsub.f32 %v3665_v57, %v1637_v16  ;;  %2669 = vmatprep.mubr.f32.mxu1 %v3768_v9  ;;  %v1938_v12 = vld [vmem:[%s3811_s10] sm:$0xff]  ;;  %v1956_v16 = vld [vmem:[%s3811_s10 + $0x90] sm:$0xff] }
 0x2d0   : > { %v1666_v53 = vsub.f32 %v3669_v60, %v1639_v15  ;;  %3053 = vpow2.f32 %v1682_v11  ;;  %2932 = vmatprep.subr.bf16.mxu1 %v3542_v61  ;;  %v1939_v11 = vld [vmem:[%s3811_s10 + $0x8] sm:$0xff]  ;;  %v1957_v15 = vld [vmem:[%s3811_s10 + $0x98] sm:$0xff] }
 0x2d1   : > { %v3776_v10 = vpop.eup %3043  ;;  %v1684_v56 = vmul.f32 1.442695, %v1665_v36  ;;  %v2943_v36 = vpack.c.bf16 %v1957_v15, %v1956_v16 }
 0x2d2   : > { %v1686_v2 = vmul.f32 1.442695, %v1666_v53  ;;  %v3778_v22 = vpop.eup %3045  ;;  %2670 = vmatmul.mubr.f32.gmra.mrb[76].mxu1 %v3776_v10  ;;  %v1641_v26 = vpop.xlane.xlu1 %1640  ;;  %1226 = vadd.xlane.f32.xlu1 %v3032_v51  ;;  %v1940_v53 = vld [vmem:[%s3811_s10 + $0x10] sm:$0xff] }
 0x2d3   : > { %v1643_v19 = vpop.xlane.xlu0 %1642  ;;  %3055 = vpow2.f32 %v1684_v56  ;;  %2934 = vmatpush3.bf16.msra.mxu1 %v3542_v61  ;;  %v1667_v0 = vsub.f32 %v3675_v62, %v1641_v26  ;;  %2672 = vmatprep.mubr.f32.mxu1 %v3778_v22 }
 0x2d4   : > { %v1668_v57 = vsub.f32 %v3679_v24, %v1643_v19  ;;  %3057 = vpow2.f32 %v1686_v2  ;;  %2936 = vmatprep.subr.bf16.mxu1 %v3548_v13  ;;  %v1958_v2 = vld [vmem:[%s3811_s10 + $0xa0] sm:$0xff] }
 0x2d5   : > { %v3786_v60 = vpop.eup %3047  ;;  %v1688_v31 = vmul.f32 1.442695, %v1667_v0  ;;  %v1942_v19 = vld [vmem:[%s3811_s10 + $0x20] sm:$0xff]  ;;  %v1943_v0 = vld [vmem:[%s3811_s10 + $0x28] sm:$0xff] }
 0x2d6   : > { %v1690_v32 = vmul.f32 1.442695, %v1668_v57  ;;  %v3050_v28 = vpop.eup %3049  ;;  %2673 = vmatmul.mubr.f32.gmra.mrb[78].mxu1 %v3786_v60  ;;  %v1645_v30 = vpop.xlane.xlu1 %1644  ;;  %1228 = vadd.xlane.f32.xlu1 %v3749_v21  ;;  %v2949_v57 = vpack.c.bf16 %v1943_v0, %v1942_v19 }
 0x2d7   : > { %v1647_v35 = vpop.xlane.xlu0 %1646  ;;  %3059 = vpow2.f32 %v1688_v31  ;;  %2938 = vmatpush3.bf16.msra.mxu1 %v3548_v13  ;;  %v1669_v61 = vsub.f32 %v3685_v55, %v1645_v30  ;;  %1710 = vadd.xlane.f32.xlu0 %v3050_v28  ;;  %v1961_v31 = vld [vmem:[%s3811_s10 + $0xb8] sm:$0xff] }
 0x2d8   : > { %v1670_v62 = vsub.f32 %v3689_v7, %v1647_v35  ;;  %3061 = vpow2.f32 %v1690_v32  ;;  %2763 = vmatprep.mubr.f32.mxu1 %v3050_v28  ;;  %v1944_v28 = vld [vmem:[%s3811_s10 + $0x30] sm:$0xff]  ;;  %v1945_v30 = vld [vmem:[%s3811_s10 + $0x38] sm:$0xff] }
 0x2d9   : > { %v3052_v24 = vpop.eup %3051  ;;  %v1692_v37 = vmul.f32 1.442695, %v1669_v61  ;;  %v2953_v35 = vpack.c.bf16 %v1945_v30, %v1944_v28  ;;  %v1962_v61 = vld [vmem:[%s3811_s10 + $0xc0] sm:$0xff] }
 0x2da   : > { %v1694_v42 = vmul.f32 1.442695, %v1670_v62  ;;  %v3054_v43 = vpop.eup %3053  ;;  %2764 = vmatmul.mubr.f32.vlgmr.msra.gmra.mrb[80].mxu1 %v3052_v24  ;;  %v1649_v5 = vpop.xlane.xlu1 %1648  ;;  %1230 = vadd.xlane.f32.xlu1 %v3756_v46  ;;  %v1963_v62 = vld [vmem:[%s3811_s10 + $0xc8] sm:$0xff] }
 0x2db   : > { %v1651_v33 = vpop.xlane.xlu0 %1650  ;;  %3063 = vpow2.f32 %v1692_v37  ;;  %v1671_v40 = vsub.f32 %v3695_v59, %v1649_v5  ;;  %1712 = vadd.xlane.f32.xlu0 %v3052_v24  ;;  %2766 = vmatprep.mubr.f32.mxu1 %v3054_v43  ;;  %v2955_v24 = vpack.c.bf16 %v1963_v62, %v1962_v61  ;;  %v1946_v37 = vld [vmem:[%s3811_s10 + $0x40] sm:$0xff]  ;;  %v1964_v5 = vld [vmem:[%s3811_s10 + $0xd0] sm:$0xff] }
 0x2dc   : > { %v1672_v13 = vsub.f32 %v3699_v1, %v1651_v33  ;;  %3065 = vpow2.f32 %v1694_v42  ;;  %v1947_v42 = vld [vmem:[%s3811_s10 + $0x48] sm:$0xff]  ;;  %v1965_v33 = vld [vmem:[%s3811_s10 + $0xd8] sm:$0xff] }
 0x2dd   : > { %v3056_v55 = vpop.eup %3055  ;;  %v1696_v7 = vmul.f32 1.442695, %v1671_v40  ;;  %v2959_v40 = vpack.c.bf16 %v1965_v33, %v1964_v5 }
 0x2de   : > { %v1698_v34 = vmul.f32 1.442695, %v1672_v13  ;;  %v3058_v47 = vpop.eup %3057  ;;  %2767 = vmatmul.mubr.f32.gmra.mrb[82].mxu1 %v3056_v55  ;;  %v1653_v58 = vpop.xlane.xlu1 %1652  ;;  %1232 = vadd.xlane.f32.xlu1 %v3758_v50  ;;  %v1948_v13 = vld [vmem:[%s3811_s10 + $0x50] sm:$0xff] }
 0x2df   : > { %v1655_v52 = vpop.xlane.xlu0 %1654  ;;  %3067 = vpow2.f32 %v1696_v7  ;;  %v1673_v4 = vsub.f32 %v3705_v25, %v1653_v58  ;;  %1714 = vadd.xlane.f32.xlu0 %v3054_v43  ;;  %2769 = vmatprep.mubr.f32.mxu1 %v3058_v47  ;;  %v2957_v43 = vpack.c.bf16 %v1947_v42, %v1946_v37 }
 0x2e0   : > { %v1674_v49 = vsub.f32 %v3709_v39, %v1655_v52  ;;  %3069 = vpow2.f32 %v1698_v34  ;;  %v1966_v34 = vld [vmem:[%s3811_s10 + $0xe0] sm:$0xff] }
 0x2e1   : > { %v3060_v59 = vpop.eup %3059  ;;  %v1700_v1 = vmul.f32 1.442695, %v1673_v4  ;;  %v1950_v52 = vld [vmem:[%s3811_s10 + $0x60] sm:$0xff]  ;;  %v1951_v4 = vld [vmem:[%s3811_s10 + $0x68] sm:$0xff] }
 0x2e2   : > { %v1702_v29 = vmul.f32 1.442695, %v1674_v49  ;;  %v3062_v51 = vpop.eup %3061  ;;  %2770 = vmatmul.mubr.f32.gmra.mrb[84].mxu1 %v3060_v59  ;;  %v1657_v41 = vpop.xlane.xlu1 %1656  ;;  %1234 = vadd.xlane.f32.xlu1 %v3766_v38  ;;  %v2939_v38 = vpack.c.bf16 %v1955_v48, %v1954_v23  ;;  %v2965_v49 = vpack.c.bf16 %v1951_v4, %v1950_v52 }
 0x2e3   : > { %v1659_v54 = vpop.xlane.xlu0 %1658  ;;  %3071 = vpow2.f32 %v1700_v1  ;;  %v1675_v21 = vsub.f32 %v3715_v17, %v1657_v41  ;;  %1716 = vadd.xlane.f32.xlu0 %v3056_v55  ;;  %2772 = vmatprep.mubr.f32.mxu1 %v3062_v51  ;;  %v1949_v55 = vld [vmem:[%s3811_s10 + $0x58] sm:$0xff] }
 0x2e4   : > { %v1676_v25 = vsub.f32 %v3723_v27, %v1659_v54  ;;  %3073 = vpow2.f32 %v1702_v29  ;;  %2940 = vmatprep.subr.bf16.mxu0 %v2939_v38  ;;  %v2961_v7 = vpack.c.bf16 %v1949_v55, %v1948_v13  ;;  %v1969_v1 = vld [vmem:[%s3811_s10 + $0xf8] sm:$0xff] }
 0x2e5   : > { %v3064_v39 = vpop.eup %3063  ;;  %v1704_v14 = vmul.f32 1.442695, %v1675_v21  ;;  %v1953_v41 = vld [vmem:[%s3811_s10 + $0x78] sm:$0xff] }
 0x2e6   : > { %v1706_v20 = vmul.f32 1.442695, %v1676_v25  ;;  %v3066_v45 = vpop.eup %3065  ;;  %2773 = vmatmul.mubr.f32.gmra.mrb[86].mxu1 %v3064_v39  ;;  %1236 = vadd.xlane.f32.xlu1 %v3768_v9  ;;  %v1661_v3 = vpop.xlane.xlu1 %1660  ;;  %v2941_v9 = vpack.c.bf16 %v1939_v11, %v1938_v12 }
 0x2e7   : > { %3075 = vpow2.f32 %v1704_v14  ;;  %v1677_v46 = vsub.f32 %v3719_v18, %v1661_v3  ;;  %1718 = vadd.xlane.f32.xlu0 %v3058_v47  ;;  %2775 = vmatprep.mubr.f32.mxu1 %v3066_v45  ;;  %v1967_v47 = vld [vmem:[%s3811_s10 + $0xe8] sm:$0xff] }
 0x2e8   : > { %3077 = vpow2.f32 %v1706_v20  ;;  %2942 = vmatpush3.bf16.msra.mxu0 %v2941_v9  ;;  %v2963_v58 = vpack.c.bf16 %v1967_v47, %v1966_v34 }
 0x2e9   : > { %v3068_v17 = vpop.eup %3067  ;;  %v1708_v63 = vmul.f32 1.442695, %v1677_v46  ;;  %2944 = vmatprep.subr.bf16.mxu0 %v2943_v36 }
 0x2ea   : > { %v3070_v44 = vpop.eup %3069  ;;  %2776 = vmatmul.mubr.f32.gmra.mrb[88].mxu1 %v3068_v17  ;;  %1238 = vadd.xlane.f32.xlu1 %v3776_v10  ;;  %v1941_v10 = vld [vmem:[%s3811_s10 + $0x18] sm:$0xff] }
 0x2eb   : > { %3079 = vpow2.f32 %v1708_v63  ;;  %1720 = vadd.xlane.f32.xlu0 %v3060_v59  ;;  %2778 = vmatprep.mubr.f32.mxu1 %v3070_v44  ;;  %v2945_v56 = vpack.c.bf16 %v1941_v10, %v1940_v53  ;;  %v1968_v59 = vld [vmem:[%s3811_s10 + $0xf0] sm:$0xff] }
 0x2ec   : > { %v2967_v29 = vpack.c.bf16 %v1969_v1, %v1968_v59 }
 0x2ed   : > { %v3072_v27 = vpop.eup %3071  ;;  %2946 = vmatpush3.bf16.msra.mxu0 %v2945_v56 }
 0x2ee   : > { %v3074_v50 = vpop.eup %3073  ;;  %2779 = vmatmul.mubr.f32.gmra.mrb[90].mxu1 %v3072_v27  ;;  %1240 = vadd.xlane.f32.xlu1 %v3778_v22  ;;  %v1959_v22 = vld [vmem:[%s3811_s10 + $0xa8] sm:$0xff] }
 0x2ef   : > { %1722 = vadd.xlane.f32.xlu0 %v3062_v51  ;;  %2781 = vmatprep.mubr.f32.mxu1 %v3074_v50  ;;  %v2947_v26 = vpack.c.bf16 %v1959_v22, %v1958_v2  ;;  %v1952_v51 = vld [vmem:[%s3811_s10 + $0x70] sm:$0xff] }
 0x2f0   : > { %v2969_v54 = vpack.c.bf16 %v1953_v41, %v1952_v51 }
 0x2f1   : > { %v3076_v18 = vpop.eup %3075  ;;  %2948 = vmatprep.subr.bf16.mxu0 %v2947_v26 }
 0x2f2   : > { %v3078_v6 = vpop.eup %3077  ;;  %2782 = vmatmul.mubr.f32.gmra.mrb[92].mxu1 %v3076_v18  ;;  %1242 = vadd.xlane.f32.xlu1 %v3786_v60  ;;  %v1960_v60 = vld [vmem:[%s3811_s10 + $0xb0] sm:$0xff] }
 0x2f3   : > { %1724 = vadd.xlane.f32.xlu0 %v3064_v39  ;;  %2784 = vmatprep.mubr.f32.mxu1 %v3078_v6  ;;  %v2951_v32 = vpack.c.bf16 %v1961_v31, %v1960_v60 }
 0x2f4   : > { %2950 = vmatpush3.bf16.msra.mxu0 %v2949_v57 }
 0x2f5   : > { %v3080_v8 = vpop.eup %3079  ;;  %2952 = vmatprep.subr.bf16.mxu0 %v2951_v32 }
 0x2f6   : > { %2785 = vmatmul.mubr.f32.gmra.mrb[94].mxu1 %v3080_v8 }
 0x2f7   : > { %1726 = vadd.xlane.f32.xlu0 %v3066_v45 }
 0x2f8   : > { %2954 = vmatpush3.bf16.msra.mxu0 %v2953_v35 }
 0x2f9   : > { %2956 = vmatprep.subr.bf16.mxu0 %v2955_v24 }
 0x2fb   : > { %1728 = vadd.xlane.f32.xlu0 %v3068_v17 }
 0x2fc   : > { %2958 = vmatpush3.bf16.msra.mxu0 %v2957_v43 }
 0x2fd   : > { %2960 = vmatprep.subr.bf16.mxu0 %v2959_v40 }
 0x2ff   : > { %1730 = vadd.xlane.f32.xlu0 %v3070_v44 }
 0x300   : > { %2962 = vmatpush3.bf16.msra.mxu0 %v2961_v7 }
 0x301   : > { %2964 = vmatprep.subr.bf16.mxu0 %v2963_v58 }
 0x303   : > { %1732 = vadd.xlane.f32.xlu0 %v3072_v27 }
 0x304   : > { %2966 = vmatpush3.bf16.msra.mxu0 %v2965_v49 }
 0x305   : > { %2968 = vmatprep.subr.bf16.mxu0 %v2967_v29 }
 0x307   : > { %1734 = vadd.xlane.f32.xlu0 %v3074_v50 }
 0x308   : > { %2970 = vmatpush3.bf16.msra.mxu0 %v2969_v54 }
 0x30b   : > { %1736 = vadd.xlane.f32.xlu0 %v3076_v18 }
 0x30f   : > { %1738 = vadd.xlane.f32.xlu0 %v3078_v6 }
 0x313   : > { %1740 = vadd.xlane.f32.xlu0 %v3080_v8 }
 0x343   : > { %v1213_v25 = vpop.xlane.xlu1 %1212 }
 0x347   : > { %v1215_v14 = vpop.xlane.xlu1 %1214 }
 0x34b   : > { %v1217_v46 = vpop.xlane.xlu1 %1216 }
 0x34f   : > { %v1219_v50 = vpop.xlane.xlu1 %1218 }
 0x353   : > { %v1221_v48 = vpop.xlane.xlu1 %1220 }
 0x357   : > { %v1223_v16 = vpop.xlane.xlu1 %1222 }
 0x35b   : > { %v1225_v56 = vpop.xlane.xlu1 %1224 }
 0x35f   : > { %v1227_v57 = vpop.xlane.xlu1 %1226 }
 0x363   : > { %v1229_v43 = vpop.xlane.xlu1 %1228 }
 0x364   : > { %v1711_v21 = vpop.xlane.xlu0 %1710 }
 0x365   : > { %3081 = vrcp.f32 %v1711_v21 }
 0x366   : > { %3083 = vrcp.f32 %v1213_v25 }
 0x367   : > { %v1231_v4 = vpop.xlane.xlu1 %1230 }
 0x368   : > { %v1713_v39 = vpop.xlane.xlu0 %1712 }
 0x369   : > { %3085 = vrcp.f32 %v1713_v39 }
 0x36a   : > { %3087 = vrcp.f32 %v1215_v14 }
 0x36b   : > { %v1233_v14 = vpop.xlane.xlu1 %1232 }
 0x36c   : > { %v1715_v20 = vpop.xlane.xlu0 %1714 }
 0x36d   : > { %3089 = vrcp.f32 %v1715_v20 }
 0x36e   : > { %3091 = vrcp.f32 %v1217_v46 }
 0x36f   : > { %v3082_v0 = vpop.eup %3081 }
 0x370   : > { %v1717_v44 = vpop.xlane.xlu0 %1716  ;;  %v3084_v31 = vpop.eup %3083 }
 0x371   : > { %3093 = vrcp.f32 %v1717_v44 }
 0x372   : > { %3095 = vrcp.f32 %v1219_v50 }
 0x373   : > { %v3086_v28 = vpop.eup %3085 }
 0x374   : > { %v1719_v6 = vpop.xlane.xlu0 %1718  ;;  %v3088_v37 = vpop.eup %3087 }
 0x375   : > { %3097 = vrcp.f32 %v1719_v6 }
 0x376   : > { %3099 = vrcp.f32 %v1221_v48 }
 0x377   : > { %v3090_v42 = vpop.eup %3089 }
 0x378   : > { %v1721_v11 = vpop.xlane.xlu0 %1720  ;;  %v3092_v55 = vpop.eup %3091 }
 0x379   : > { %3101 = vrcp.f32 %v1721_v11  ;;  %v1235_v11 = vpop.xlane.xlu1 %1234 }
 0x37a   : > { %3103 = vrcp.f32 %v1223_v16 }
 0x37b   : > { %v3094_v34 = vpop.eup %3093 }
 0x37c   : > { %v1723_v36 = vpop.xlane.xlu0 %1722  ;;  %v3096_v59 = vpop.eup %3095 }
 0x37d   : > { %3105 = vrcp.f32 %v1723_v36 }
 0x37e   : > { %3107 = vrcp.f32 %v1225_v56 }
 0x37f   : > { %v3098_v1 = vpop.eup %3097 }
 0x380   : > { %v1725_v26 = vpop.xlane.xlu0 %1724  ;;  %v3100_v25 = vpop.eup %3099 }
 0x381   : > { %3109 = vrcp.f32 %v1725_v26 }
 0x382   : > { %3111 = vrcp.f32 %v1227_v57 }
 0x383   : > { %v3102_v39 = vpop.eup %3101 }
 0x384   : > { %v1727_v35 = vpop.xlane.xlu0 %1726 }
 0x385   : > { %3113 = vrcp.f32 %v1727_v35 }
 0x386   : > { %3115 = vrcp.f32 %v1229_v43 }
 0x388   : > { %v1729_v7 = vpop.xlane.xlu0 %1728 }
 0x389   : > { %3117 = vrcp.f32 %v1729_v7 }
 0x38a   : > { %3119 = vrcp.f32 %v1231_v4 }
 0x38c   : > { %v1731_v51 = vpop.xlane.xlu0 %1730 }
 0x38d   : > { %v2653_v45 = vpop.f32.mrb[64].mxu1  ;;  %3121 = vrcp.f32 %v1731_v51 }
 0x38e   : > { %v1310_v3 = vpop.f32.mrb[65].mxu1  ;;  %v1406_v5 = vmul.f32 %v3088_v37, %v2653_v45  ;;  %3123 = vrcp.f32 %v1233_v14 }
 0x38f   : > { %v1405_v30 = vmul.f32 %v3084_v31, %v1310_v3  ;;  %v1237_v31 = vpop.xlane.xlu1 %1236 }
 0x391   : > { %v3845_v17 = vpop.f32.mrb[66].mxu1 }
 0x392   : > { %v1320_v63 = vpop.f32.mrb[67].mxu1  ;;  %v1408_v29 = vmul.f32 %v3096_v59, %v3845_v17  ;;  %v3104_v17 = vpop.eup %3103 }
 0x393   : > { %v1407_v47 = vmul.f32 %v3092_v55, %v1320_v63  ;;  %v1733_v63 = vpop.xlane.xlu0 %1732  ;;  %v3106_v44 = vpop.eup %3105 }
 0x394   : > { %3125 = vrcp.f32 %v1733_v63 }
 0x395   : > { %v3847_v27 = vpop.f32.mrb[68].mxu1  ;;  %3127 = vrcp.f32 %v1235_v11 }
 0x396   : > { %v3849_v18 = vpop.f32.mrb[69].mxu1  ;;  %v1410_v50 = vmul.f32 %v3104_v17, %v3847_v27  ;;  %v1921_v17 = vld [vmem:[#allocation2 + $0x8] sm:$0xff] }
 0x397   : > { %v1409_v20 = vmul.f32 %v3100_v25, %v3849_v18  ;;  %v3108_v18 = vpop.eup %3107  ;;  %v1735_v26 = vpop.xlane.xlu0 %1734 }
 0x398   : > { %v3110_v36 = vpop.eup %3109  ;;  %3129 = vrcp.f32 %v1735_v26 }
 0x399   : > { %v3851_v8 = vpop.f32.mrb[70].mxu1  ;;  %v3112_v57 = vpop.eup %3111  ;;  %3131 = vrcp.f32 %v1237_v31 }
 0x39a   : > { %v3853_v23 = vpop.f32.mrb[71].mxu1 }
 0x39b   : > { %v1411_v56 = vmul.f32 %v3108_v18, %v3853_v23  ;;  %v1737_v23 = vpop.xlane.xlu0 %1736  ;;  %v1923_v18 = vld [vmem:[#allocation2 + $0x18] sm:$0xff] }
 0x39c   : > { %3133 = vrcp.f32 %v1737_v23 }
 0x39d   : > { %v3855_v38 = vpop.f32.mrb[72].mxu1 }
 0x39e   : > { %v3857_v12 = vpop.f32.mrb[73].mxu1 }
 0x39f   : > { %v1739_v43 = vpop.xlane.xlu0 %1738 }
 0x3a1   : > { %v3859_v9 = vpop.f32.mrb[74].mxu1 }
 0x3a2   : > { %v3861_v15 = vpop.f32.mrb[75].mxu1 }
 0x3a5   : > { %v3863_v53 = vpop.f32.mrb[76].mxu1 }
 0x3a6   : > { %v3865_v10 = vpop.f32.mrb[77].mxu1 }
 0x3a9   : > { %v3867_v2 = vpop.f32.mrb[78].mxu1 }
 0x3aa   : > { %v3869_v22 = vpop.f32.mrb[79].mxu1 }
 0x3ad   : > { %v2765_v19 = vpop.f32.mrb[80].mxu1 }
 0x3ae   : > { %v1808_v60 = vpop.f32.mrb[81].mxu1  ;;  %v1904_v61 = vmul.f32 %v3086_v28, %v2765_v19 }
 0x3af   : > { %v1903_v32 = vmul.f32 %v3082_v0, %v1808_v60  ;;  %v3114_v60 = vpop.eup %3113 }
 0x3b1   : > { %v2768_v62 = vpop.f32.mrb[82].mxu1  ;;  %2034 = vmatprep.mubr.f32.mxu0 %v1903_v32  ;;  %v1412_v32 = vmul.f32 %v3112_v57, %v3851_v8 }
 0x3b2   : > { %v1818_v24 = vpop.f32.mrb[83].mxu1  ;;  %2035 = vmatmul.mubr.f32.vlgmr.msra.gmra.mrb[64].mxu0 %v1405_v30  ;;  %v1906_v58 = vmul.f32 %v3094_v34, %v2768_v62  ;;  %v3116_v30 = vpop.eup %3115 }
 0x3b3   : > { %2039 = vmatprep.mubr.f32.mxu0 %v1904_v61  ;;  %v1905_v33 = vmul.f32 %v3090_v42, %v1818_v24  ;;  %v3118_v35 = vpop.eup %3117  ;;  %v1413_v61 = vmul.f32 %v3116_v30, %v3857_v12  ;;  %v1239_v24 = vpop.xlane.xlu1 %1238 }
 0x3b4   : > { %v3120_v37 = vpop.eup %3119  ;;  %3135 = vrcp.f32 %v1239_v24  ;;  %v1741_v34 = vpop.xlane.xlu0 %1740 }
 0x3b5   : > { %v2771_v40 = vpop.f32.mrb[84].mxu1  ;;  %v3122_v42 = vpop.eup %3121  ;;  %v1414_v8 = vmul.f32 %v3120_v37, %v3855_v38  ;;  %3137 = vrcp.f32 %v1739_v43 }
 0x3b6   : > { %v1828_v13 = vpop.f32.mrb[85].mxu1  ;;  %2040 = vmatmul.mubr.f32.gmra.mrb[66].mxu0 %v1406_v5  ;;  %v1908_v45 = vmul.f32 %v3102_v39, %v2771_v40 }
 0x3b7   : > { %2044 = vmatprep.mubr.f32.mxu0 %v1905_v33  ;;  %v1907_v41 = vmul.f32 %v3098_v1, %v1828_v13  ;;  %v3124_v33 = vpop.eup %3123  ;;  %v1241_v13 = vpop.xlane.xlu1 %1240 }
 0x3b8   : > { %v3126_v40 = vpop.eup %3125  ;;  %v1415_v12 = vmul.f32 %v3124_v33, %v3861_v15  ;;  %3139 = vrcp.f32 %v1241_v13  ;;  %v1928_v13 = vld [vmem:[#allocation2 + $0x40] sm:$0xff] }
 0x3b9   : > { %v2774_v52 = vpop.f32.mrb[86].mxu1  ;;  %v3128_v7 = vpop.eup %3127  ;;  %3141 = vrcp.f32 %v1741_v34 }
 0x3ba   : > { %v1838_v49 = vpop.f32.mrb[87].mxu1  ;;  %2045 = vmatmul.mubr.f32.gmra.mrb[68].mxu0 %v1407_v47  ;;  %v1910_v19 = vmul.f32 %v3110_v36, %v2774_v52  ;;  %v3130_v47 = vpop.eup %3129  ;;  %v1416_v38 = vmul.f32 %v3128_v7, %v3859_v9 }
 0x3bb   : > { %2049 = vmatprep.mubr.f32.mxu0 %v1906_v58  ;;  %v1909_v6 = vmul.f32 %v3106_v44, %v1838_v49  ;;  %v1243_v52 = vpop.xlane.xlu1 %1242  ;;  %v3132_v4 = vpop.eup %3131 }
 0x3bc   : > { %v3134_v49 = vpop.eup %3133  ;;  %v1417_v15 = vmul.f32 %v3132_v4, %v3865_v10  ;;  %3143 = vrcp.f32 %v1243_v52 }
 0x3bd   : > { %v2777_v54 = vpop.f32.mrb[88].mxu1 }
 0x3be   : > { %v1848_v21 = vpop.f32.mrb[89].mxu1  ;;  %2050 = vmatmul.mubr.f32.gmra.mrb[70].mxu0 %v1408_v29  ;;  %v1912_v62 = vmul.f32 %v3118_v35, %v2777_v54  ;;  %v3136_v1 = vpop.eup %3135 }
 0x3bf   : > { %2054 = vmatprep.mubr.f32.mxu0 %v1907_v41  ;;  %v1911_v28 = vmul.f32 %v3114_v60, %v1848_v21  ;;  %v3138_v29 = vpop.eup %3137  ;;  %v1418_v51 = vmul.f32 %v3136_v1, %v3863_v53 }
 0x3c1   : > { %v2780_v3 = vpop.f32.mrb[90].mxu1 }
 0x3c2   : > { %v1858_v46 = vpop.f32.mrb[91].mxu1  ;;  %2055 = vmatmul.mubr.f32.gmra.mrb[72].mxu0 %v1409_v20  ;;  %v1914_v55 = vmul.f32 %v3126_v40, %v2780_v3  ;;  %v3140_v41 = vpop.eup %3139  ;;  %v1920_v20 = vld [vmem:[#allocation2] sm:$0xff] }
 0x3c3   : > { %2059 = vmatprep.mubr.f32.mxu0 %v1908_v45  ;;  %v1913_v5 = vmul.f32 %v3122_v42, %v1858_v46  ;;  %v3142_v54 = vpop.eup %3141  ;;  %v1419_v21 = vmul.f32 %v3140_v41, %v3869_v22 }
 0x3c5   : > { %v3874_v48 = vpop.f32.mrb[92].mxu1 }
 0x3c6   : > { %v1868_v16 = vpop.f32.mrb[93].mxu1  ;;  %2060 = vmatmul.mubr.f32.gmra.mrb[74].mxu0 %v1410_v50  ;;  %v1916_v59 = vmul.f32 %v3134_v49, %v3874_v48  ;;  %v3144_v10 = vpop.eup %3143  ;;  %v1930_v49 = vld [vmem:[#allocation2 + $0x50] sm:$0xff] }
 0x3c7   : > { %2064 = vmatprep.mubr.f32.mxu0 %v1909_v6  ;;  %v1915_v58 = vmul.f32 %v3130_v47, %v1868_v16  ;;  %v1420_v39 = vmul.f32 %v3144_v10, %v3867_v2  ;;  %v1922_v6 = vld [vmem:[#allocation2 + $0x10] sm:$0xff]  ;;  %v1929_v47 = vld [vmem:[#allocation2 + $0x48] sm:$0xff] }
 0x3c9   : > { %v3877_v0 = vpop.f32.mrb[94].mxu1 }
 0x3ca   : > { %v1878_v27 = vpop.f32.mrb[95].mxu1  ;;  %2065 = vmatmul.mubr.f32.gmra.mrb[76].mxu0 %v1411_v56  ;;  %v1918_v25 = vmul.f32 %v3142_v54, %v3877_v0  ;;  %v1924_v0 = vld [vmem:[#allocation2 + $0x20] sm:$0xff] }
 0x3cb   : > { %2069 = vmatprep.mubr.f32.mxu0 %v1910_v19  ;;  %v1917_v9 = vmul.f32 %v3138_v29, %v1878_v27 }
 0x3ce   : > { %2070 = vmatmul.mubr.f32.gmra.mrb[78].mxu0 %v1412_v32  ;;  %v1925_v32 = vld [vmem:[#allocation2 + $0x28] sm:$0xff] }
 0x3cf   : > { %2074 = vmatprep.mubr.f32.mxu0 %v1911_v28 }
 0x3d2   : > { %2075 = vmatmul.mubr.f32.gmra.mrb[80].mxu0 %v1413_v61  ;;  %v1926_v61 = vld [vmem:[#allocation2 + $0x30] sm:$0xff] }
 0x3d3   : > { %2079 = vmatprep.mubr.f32.mxu0 %v1912_v62 }
 0x3d6   : > { %2080 = vmatmul.mubr.f32.gmra.mrb[82].mxu0 %v1414_v8  ;;  %v1927_v8 = vld [vmem:[#allocation2 + $0x38] sm:$0xff] }
 0x3d7   : > { %2084 = vmatprep.mubr.f32.mxu0 %v1913_v5 }
 0x3da   : > { %2085 = vmatmul.mubr.f32.gmra.mrb[84].mxu0 %v1415_v12 }
 0x3db   : > { %2089 = vmatprep.mubr.f32.mxu0 %v1914_v55 }
 0x3de   : > { %2090 = vmatmul.mubr.f32.gmra.mrb[86].mxu0 %v1416_v38 }
 0x3df   : > { %2094 = vmatprep.mubr.f32.mxu0 %v1915_v58 }
 0x3e2   : > { %2095 = vmatmul.mubr.f32.gmra.mrb[88].mxu0 %v1417_v15 }
 0x3e3   : > { %2099 = vmatprep.mubr.f32.mxu0 %v1916_v59 }
 0x3e6   : > { %2100 = vmatmul.mubr.f32.gmra.mrb[90].mxu0 %v1418_v51  ;;  %v1931_v51 = vld [vmem:[#allocation2 + $0x58] sm:$0xff] }
 0x3e7   : > { %2104 = vmatprep.mubr.f32.mxu0 %v1917_v9 }
 0x3ea   : > { %2105 = vmatmul.mubr.f32.gmra.mrb[92].mxu0 %v1419_v21 }
 0x3eb   : > { %2109 = vmatprep.mubr.f32.mxu0 %v1918_v25  ;;  %v1932_v25 = vld [vmem:[#allocation2 + $0x60] sm:$0xff] }
 0x3ee   : > { %2110 = vmatmul.mubr.f32.gmra.mrb[94].mxu0 %v1420_v39 }
 0x485   : > { %v2515_v14 = vpop.f32.mrb[64].mxu0 }
 0x486   : > { %v2516_v45 = vpop.f32.mrb[65].mxu0 }
 0x487   : > { %v2517_v3 = vadd.f32 %v2516_v45, %v2515_v14  ;;  %v1933_v45 = vld [vmem:[#allocation2 + $0x68] sm:$0xff] }
 0x489   : > { %v2115_v53 = vadd.f32 %v2517_v3, %v1920_v20  ;;  %v2518_v46 = vpop.f32.mrb[66].mxu0 }
 0x48a   : > { %v2519_v63 = vpop.f32.mrb[67].mxu0 }
 0x48b   : > { %2132 = vst.msk [vmem:[#allocation2] sm:$0xff] %vm286_vm1, %v2115_v53  ;;  %v2520_v44 = vadd.f32 %v2519_v63, %v2518_v46  ;;  %v1934_v63 = vld [vmem:[#allocation2 + $0x70] sm:$0xff] }
 0x48d   : > { %v2116_v22 = vadd.f32 %v2520_v44, %v1921_v17  ;;  %v2521_v50 = vpop.f32.mrb[68].mxu0 }
 0x48e   : > { %v2522_v48 = vpop.f32.mrb[69].mxu0 }
 0x48f   : > { %2133 = vst.msk [vmem:[#allocation2 + $0x8] sm:$0xff] %vm286_vm1, %v2116_v22  ;;  %v2523_v11 = vadd.f32 %v2522_v48, %v2521_v50  ;;  %v1935_v48 = vld [vmem:[#allocation2 + $0x78] sm:$0xff] }
 0x491   : > { %v2117_v2 = vadd.f32 %v2523_v11, %v1922_v6  ;;  %v2524_v16 = vpop.f32.mrb[70].mxu0 }
 0x492   : > { %v2525_v36 = vpop.f32.mrb[71].mxu0 }
 0x493   : > { %2134 = vst.msk [vmem:[#allocation2 + $0x10] sm:$0xff] %vm286_vm1, %v2117_v2  ;;  %v2526_v56 = vadd.f32 %v2525_v36, %v2524_v16  ;;  %v2348_v36 = vld [vmem:[%s3960_s3] ss:$0 sm:$0xff] (!%p2347_p7) }
 0x495   : > { %v2118_v26 = vadd.f32 %v2526_v56, %v1923_v18  ;;  %v2527_v19 = vpop.f32.mrb[72].mxu0  ;;  %v2152_v18 = vld [vmem:[#allocation2] sm:$0xff] (!%p2347_p7) }
 0x496   : > { %v2528_v27 = vpop.f32.mrb[73].mxu0  ;;  %v2153_v56 = vld [vmem:[#allocation2 + $0x8] sm:$0xff] (!%p2347_p7) }
 0x497   : > { %2135 = vst.msk [vmem:[#allocation2 + $0x18] sm:$0xff] %vm286_vm1, %v2118_v26  ;;  %v2529_v57 = vadd.f32 %v2528_v27, %v2527_v19  ;;  %v2175_v26 = vadd.f32 (!%p2347_p7), %v2348_v36, %v2152_v18  ;;  %v2176_v19 = vadd.f32 (!%p2347_p7), %v2348_v36, %v2153_v56 }
 0x499   : > { %v2119_v60 = vadd.f32 %v2529_v57, %v1924_v0  ;;  %v2530_v31 = vpop.f32.mrb[74].mxu0  ;;  %2192 = vst.msk [vmem:[%s3253_s28] sm:$0xff] (!%p2347_p7), %vm286_vm1, %v2175_v26  ;;  %2193 = vst.msk [vmem:[%s3253_s28 + $0x8] sm:$0xff] (!%p2347_p7), %vm286_vm1, %v2176_v19 }
 0x49a   : > { %v2531_v28 = vpop.f32.mrb[75].mxu0  ;;  %v2154_v0 = vld [vmem:[#allocation2 + $0x10] sm:$0xff] (!%p2347_p7) }
 0x49b   : > { %2136 = vst.msk [vmem:[#allocation2 + $0x20] sm:$0xff] %vm286_vm1, %v2119_v60  ;;  %v2532_v30 = vadd.f32 %v2531_v28, %v2530_v31  ;;  %v2177_v60 = vadd.f32 (!%p2347_p7), %v2348_v36, %v2154_v0 }
 0x49d   : > { %v2120_v23 = vadd.f32 %v2532_v30, %v1925_v32  ;;  %v2533_v35 = vpop.f32.mrb[76].mxu0  ;;  %2194 = vst.msk [vmem:[%s3253_s28 + $0x10] sm:$0xff] (!%p2347_p7), %vm286_vm1, %v2177_v60 }
 0x49e   : > { %v2534_v62 = vpop.f32.mrb[77].mxu0  ;;  %v2155_v27 = vld [vmem:[#allocation2 + $0x18] sm:$0xff] (!%p2347_p7) }
 0x49f   : > { %2137 = vst.msk [vmem:[#allocation2 + $0x28] sm:$0xff] %vm286_vm1, %v2120_v23  ;;  %v2535_v24 = vadd.f32 %v2534_v62, %v2533_v35  ;;  %v2178_v31 = vadd.f32 (!%p2347_p7), %v2348_v36, %v2155_v27 }
 0x4a1   : > { %v2121_v37 = vadd.f32 %v2535_v24, %v1926_v61  ;;  %v2536_v42 = vpop.f32.mrb[78].mxu0  ;;  %2195 = vst.msk [vmem:[%s3253_s28 + $0x18] sm:$0xff] (!%p2347_p7), %vm286_vm1, %v2178_v31 }
 0x4a2   : > { %v2537_v43 = vpop.f32.mrb[79].mxu0  ;;  %v2156_v57 = vld [vmem:[#allocation2 + $0x20] sm:$0xff] (!%p2347_p7) }
 0x4a3   : > { %2138 = vst.msk [vmem:[#allocation2 + $0x30] sm:$0xff] %vm286_vm1, %v2121_v37  ;;  %v2538_v5 = vadd.f32 %v2537_v43, %v2536_v42  ;;  %v2179_v32 = vadd.f32 (!%p2347_p7), %v2348_v36, %v2156_v57 }
 0x4a5   : > { %v2122_v33 = vadd.f32 %v2538_v5, %v1927_v8  ;;  %v2539_v40 = vpop.f32.mrb[80].mxu0  ;;  %2196 = vst.msk [vmem:[%s3253_s28 + $0x20] sm:$0xff] (!%p2347_p7), %vm286_vm1, %v2179_v32 }
 0x4a6   : > { %v2540_v12 = vpop.f32.mrb[81].mxu0  ;;  %v2157_v28 = vld [vmem:[#allocation2 + $0x28] sm:$0xff] (!%p2347_p7) }
 0x4a7   : > { %2139 = vst.msk [vmem:[#allocation2 + $0x38] sm:$0xff] %vm286_vm1, %v2122_v33  ;;  %v2541_v55 = vadd.f32 %v2540_v12, %v2539_v40  ;;  %v2180_v35 = vadd.f32 (!%p2347_p7), %v2348_v36, %v2157_v28 }
 0x4a9   : > { %v2123_v7 = vadd.f32 %v2541_v55, %v1928_v13  ;;  %v2542_v34 = vpop.f32.mrb[82].mxu0  ;;  %2197 = vst.msk [vmem:[%s3253_s28 + $0x28] sm:$0xff] (!%p2347_p7), %vm286_vm1, %v2180_v35 }
 0x4aa   : > { %v2543_v38 = vpop.f32.mrb[83].mxu0  ;;  %v2158_v30 = vld [vmem:[#allocation2 + $0x30] sm:$0xff] (!%p2347_p7) }
 0x4ab   : > { %2140 = vst.msk [vmem:[#allocation2 + $0x40] sm:$0xff] %vm286_vm1, %v2123_v7  ;;  %v2544_v58 = vadd.f32 %v2543_v38, %v2542_v34  ;;  %v2181_v61 = vadd.f32 (!%p2347_p7), %v2348_v36, %v2158_v30 }
 0x4ad   : > { %v2124_v52 = vadd.f32 %v2544_v58, %v1929_v47  ;;  %v2545_v4 = vpop.f32.mrb[84].mxu0  ;;  %2198 = vst.msk [vmem:[%s3253_s28 + $0x30] sm:$0xff] (!%p2347_p7), %vm286_vm1, %v2181_v61 }
 0x4ae   : > { %v2546_v15 = vpop.f32.mrb[85].mxu0  ;;  %v2159_v23 = vld [vmem:[#allocation2 + $0x38] sm:$0xff] (!%p2347_p7) }
 0x4af   : > { %2141 = vst.msk [vmem:[#allocation2 + $0x48] sm:$0xff] %vm286_vm1, %v2124_v52  ;;  %v2547_v59 = vadd.f32 %v2546_v15, %v2545_v4  ;;  %v2182_v62 = vadd.f32 (!%p2347_p7), %v2348_v36, %v2159_v23 }
 0x4b1   : > { %v2125_v1 = vadd.f32 %v2547_v59, %v1930_v49  ;;  %v2548_v29 = vpop.f32.mrb[86].mxu0  ;;  %2199 = vst.msk [vmem:[%s3253_s28 + $0x38] sm:$0xff] (!%p2347_p7), %vm286_vm1, %v2182_v62 }
 0x4b2   : > { %v2549_v9 = vpop.f32.mrb[87].mxu0  ;;  %v2160_v24 = vld [vmem:[#allocation2 + $0x40] sm:$0xff] (!%p2347_p7) }
 0x4b3   : > { %2142 = vst.msk [vmem:[#allocation2 + $0x50] sm:$0xff] %vm286_vm1, %v2125_v1  ;;  %v2550_v41 = vadd.f32 %v2549_v9, %v2548_v29  ;;  %v2183_v8 = vadd.f32 (!%p2347_p7), %v2348_v36, %v2160_v24 }
 0x4b5   : > { %v2126_v54 = vadd.f32 %v2550_v41, %v1931_v51  ;;  %v2551_v21 = vpop.f32.mrb[88].mxu0  ;;  %2200 = vst.msk [vmem:[%s3253_s28 + $0x40] sm:$0xff] (!%p2347_p7), %vm286_vm1, %v2183_v8 }
 0x4b6   : > { %v2552_v10 = vpop.f32.mrb[89].mxu0  ;;  %v2161_v37 = vld [vmem:[#allocation2 + $0x48] sm:$0xff] (!%p2347_p7) }
 0x4b7   : > { %2143 = vst.msk [vmem:[#allocation2 + $0x58] sm:$0xff] %vm286_vm1, %v2126_v54  ;;  %v2553_v39 = vadd.f32 %v2552_v10, %v2551_v21  ;;  %v2184_v43 = vadd.f32 (!%p2347_p7), %v2348_v36, %v2161_v37 }
 0x4b9   : > { %v2127_v14 = vadd.f32 %v2553_v39, %v1932_v25  ;;  %v2554_v20 = vpop.f32.mrb[90].mxu0  ;;  %2201 = vst.msk [vmem:[%s3253_s28 + $0x48] sm:$0xff] (!%p2347_p7), %vm286_vm1, %v2184_v43 }
 0x4ba   : > { %v2555_v3 = vpop.f32.mrb[91].mxu0  ;;  %v2162_v42 = vld [vmem:[#allocation2 + $0x50] sm:$0xff] (!%p2347_p7) }
 0x4bb   : > { %2144 = vst.msk [vmem:[#allocation2 + $0x60] sm:$0xff] %vm286_vm1, %v2127_v14  ;;  %v2556_v53 = vadd.f32 %v2555_v3, %v2554_v20  ;;  %v2185_v5 = vadd.f32 (!%p2347_p7), %v2348_v36, %v2162_v42 }
 0x4bd   : > { %v2128_v46 = vadd.f32 %v2556_v53, %v1933_v45  ;;  %v2557_v17 = vpop.f32.mrb[92].mxu0  ;;  %2202 = vst.msk [vmem:[%s3253_s28 + $0x50] sm:$0xff] (!%p2347_p7), %vm286_vm1, %v2185_v5 }
 0x4be   : > { %v2558_v44 = vpop.f32.mrb[93].mxu0  ;;  %v2163_v33 = vld [vmem:[#allocation2 + $0x58] sm:$0xff] (!%p2347_p7) }
 0x4bf   : > { %2145 = vst.msk [vmem:[#allocation2 + $0x68] sm:$0xff] %vm286_vm1, %v2128_v46  ;;  %v2559_v22 = vadd.f32 %v2558_v44, %v2557_v17  ;;  %v2186_v12 = vadd.f32 (!%p2347_p7), %v2348_v36, %v2163_v33 }
 0x4c1   : > { %v2129_v50 = vadd.f32 %v2559_v22, %v1934_v63  ;;  %v2560_v6 = vpop.f32.mrb[94].mxu0  ;;  %2151 = sbr.rel (%p2347_p7) target bundleno = 1234 (0x4d2), region = 48  ;;  %2203 = vst.msk [vmem:[%s3253_s28 + $0x58] sm:$0xff] (!%p2347_p7), %vm286_vm1, %v2186_v12 }
 0x4c2   : > { %v2561_v11 = vpop.f32.mrb[95].mxu0  ;;  %v2164_v40 = vld [vmem:[#allocation2 + $0x60] sm:$0xff] (!%p2347_p7) }
 0x4c3   : > { %2146 = vst.msk [vmem:[#allocation2 + $0x70] sm:$0xff] %vm286_vm1, %v2129_v50  ;;  %v2562_v2 = vadd.f32 %v2561_v11, %v2560_v6  ;;  %v2187_v55 = vadd.f32 (!%p2347_p7), %v2348_v36, %v2164_v40 }
 0x4c5   : > { %v2130_v16 = vadd.f32 %v2562_v2, %v1935_v48  ;;  %2204 = vst.msk [vmem:[%s3253_s28 + $0x60] sm:$0xff] (!%p2347_p7), %vm286_vm1, %v2187_v55 }
 0x4c6   : > { %v2165_v13 = vld [vmem:[#allocation2 + $0x68] sm:$0xff] (!%p2347_p7) }
 0x4c7   : > { %2147 = vst.msk [vmem:[#allocation2 + $0x78] sm:$0xff] %vm286_vm1, %v2130_v16  ;;  %v2188_v7 = vadd.f32 (!%p2347_p7), %v2348_v36, %v2165_v13 }
 0x4c9   : > { %2205 = vst.msk [vmem:[%s3253_s28 + $0x68] sm:$0xff] %vm286_vm1, %v2188_v7 }
 0x4ca   : > { %v2166_v34 = vld [vmem:[#allocation2 + $0x70] sm:$0xff] }
 0x4cb   : > { %v2189_v38 = vadd.f32 %v2348_v36, %v2166_v34 }
 0x4cd   : > { %2206 = vst.msk [vmem:[%s3253_s28 + $0x70] sm:$0xff] %vm286_vm1, %v2189_v38 }
 0x4ce   : > { %v2167_v47 = vld [vmem:[#allocation2 + $0x78] sm:$0xff] }
 0x4cf   : > { %v2190_v58 = vadd.f32 %v2348_v36, %v2167_v47 }
 0x4d1   : > { %2207 = vst.msk [vmem:[%s3253_s28 + $0x78] sm:$0xff] %vm286_vm1, %v2190_v58 }
 0x4d2 PF: > { %s14_s19 = sadd.s32 1, %s3183_s19   ;;  %s3962_s15 = smov %s3175_s17 }
 0x4d3   : > { %p11_p8 = scmp.ge.s32.totalorder %s14_s19, 10   ;;  %s3963_s16 = smov %s3179_s18 }
 0x4d4   : > { %s3964_s17 = smov %s3967_s20  ;;  %s3965_s18 = smov %s3971_s21 }
 0x4d5   :  { %13 = sbr.rel (!%p11_p8) target bundleno = 3 (0x3), region = 83 }

</bundles_post_ra>
